<compile_context>
chip_gen: v5e
topology: v5e:2x2
jax: 0.10.0
libtpu: 0.0.40
codegen_flags: <defaults>
</compile_context>

<pallas_src>
import functools

import jax
import jax.numpy as jnp
from jax.experimental import pallas as pl
from jax.experimental.pallas import tpu as pltpu


def residual_block_kernel(x_ref, wqkv_ref, bqkv_ref, wo_ref, bo_ref,
                          gamma_ref, beta_ref, o_ref, attn_ref, *, num_heads):
    Bt, S, E = x_ref.shape
    H = num_heads
    Dh = E // H
    scale = 1.0 / (Dh ** 0.5)

    x_bf = x_ref[...]                              # (Bt, S, E) bf16
    x2d = x_bf.reshape(Bt * S, E)                  # token-major slab for MXU

    # Fused QKV projection: one MXU pass over a 3E-wide, lane-dense N dim.
    qkv = jnp.dot(x2d, wqkv_ref[...],
                  preferred_element_type=jnp.float32) + bqkv_ref[...]

    q3 = qkv[:, :E].astype(jnp.bfloat16).reshape(Bt, S, E)
    k3 = qkv[:, E:2 * E].astype(jnp.bfloat16).reshape(Bt, S, E)
    v3 = qkv[:, 2 * E:].astype(jnp.bfloat16).reshape(Bt, S, E)

    # Per-head attention, batched over the Bt batch rows (no explicit K
    # transpose, no concatenate: head outputs land in the VMEM scratch).
    for h in range(H):
        lo = h * Dh
        qh = q3[:, :, lo:lo + Dh]                  # (Bt, S, Dh)
        kh = k3[:, :, lo:lo + Dh]
        vh = v3[:, :, lo:lo + Dh]
        s = jnp.einsum('bqd,bkd->bqk', qh, kh,
                       preferred_element_type=jnp.float32) * scale
        s = s - jnp.max(s, axis=-1, keepdims=True)
        p = jnp.exp(s)
        p = p * pl.reciprocal(jnp.sum(p, axis=-1, keepdims=True), approx=True)
        oh = jnp.einsum('bqk,bkd->bqd', p.astype(jnp.bfloat16), vh,
                        preferred_element_type=jnp.float32)      # (Bt, S, Dh)
        attn_ref[:, lo:lo + Dh] = oh.reshape(Bt * S, Dh)

    # Output projection.
    attn = attn_ref[...].astype(jnp.bfloat16)                    # (Bt*S, E)
    out = jnp.dot(attn, wo_ref[...],
                  preferred_element_type=jnp.float32) + bo_ref[...]

    # Residual add + LayerNorm (eps=1e-5, biased variance, like nn.LayerNorm),
    # all elementwise math in f32.
    y = out + x2d.astype(jnp.float32)
    mean = jnp.mean(y, axis=-1, keepdims=True)
    var = jnp.mean((y - mean) * (y - mean), axis=-1, keepdims=True)
    y = (y - mean) * jax.lax.rsqrt(var + 1e-5)
    y = y * gamma_ref[...] + beta_ref[...]

    # TODO(synk): Dropout implemented as identity (inference/eval semantics);
    # training-mode dropout would need pltpu.prng_seed / prng_random_bits.
    o_ref[...] = y.reshape(Bt, S, E).astype(o_ref.dtype)


def _pick_block_b(B, S, target_rows=256):
    """Largest divisor of B with block_b*S <= target_rows, keeping >=2 grid
    steps when possible (so both v7x TensorCores get work)."""
    candidates = [d for d in range(1, B + 1) if B % d == 0]
    multi = [d for d in candidates if B // d >= 2]
    if multi:
        candidates = multi
    fitting = [d for d in candidates if d * S <= target_rows]
    return max(fitting) if fitting else min(candidates)


def residual_block_pallas(x, params, num_heads, block_b=None):
    B, S, E = x.shape
    wqkv_t, bqkv, wo_t, bo, gamma, beta = params
    if block_b is None:
        block_b = _pick_block_b(B, S)
    assert B % block_b == 0, "block_b must divide the batch"
    grid_b = B // block_b

    # bf16 only for MXU operands; biases / LayerNorm params stay f32.
    x_bf = x.astype(jnp.bfloat16)
    wqkv_bf = wqkv_t.astype(jnp.bfloat16)
    wo_bf = wo_t.astype(jnp.bfloat16)

    kernel = functools.partial(residual_block_kernel, num_heads=num_heads)
    return pl.pallas_call(
        kernel,
        out_shape=jax.ShapeDtypeStruct((B, S, E), x.dtype),
        grid_spec=pltpu.PrefetchScalarGridSpec(
            num_scalar_prefetch=0,
            grid=(grid_b,),
            in_specs=[
                pl.BlockSpec((block_b, S, E), lambda b: (b, 0, 0)),  # x
                pl.BlockSpec((E, 3 * E), lambda b: (0, 0)),          # Wqkv^T
                pl.BlockSpec((1, 3 * E), lambda b: (0, 0)),          # bqkv
                pl.BlockSpec((E, E), lambda b: (0, 0)),              # Wo^T
                pl.BlockSpec((1, E), lambda b: (0, 0)),              # bo
                pl.BlockSpec((1, E), lambda b: (0, 0)),              # gamma
                pl.BlockSpec((1, E), lambda b: (0, 0)),              # beta
            ],
            out_specs=pl.BlockSpec((block_b, S, E), lambda b: (b, 0, 0)),
            scratch_shapes=[pltpu.VMEM((block_b * S, E), jnp.float32)],
        ),
        compiler_params=pltpu.CompilerParams(
            dimension_semantics=("parallel",)),
    )(x_bf, wqkv_bf, bqkv, wo_bf, bo, gamma, beta)


def residual_block_reference(x, params, num_heads):
    """Plain-JAX f32 reference for correctness checking."""
    wqkv_t, bqkv, wo_t, bo, gamma, beta = params
    B, S, E = x.shape
    H = num_heads
    Dh = E // H
    qkv = x @ wqkv_t + bqkv
    q, k, v = qkv[..., :E], qkv[..., E:2 * E], qkv[..., 2 * E:]
    q = q.reshape(B, S, H, Dh).transpose(0, 2, 1, 3)
    k = k.reshape(B, S, H, Dh).transpose(0, 2, 1, 3)
    v = v.reshape(B, S, H, Dh).transpose(0, 2, 1, 3)
    s = jnp.einsum('bhqd,bhkd->bhqk', q, k) / jnp.sqrt(Dh).astype(x.dtype)
    p = jax.nn.softmax(s, axis=-1)
    o = jnp.einsum('bhqk,bhkd->bhqd', p, v).transpose(0, 2, 1, 3).reshape(B, S, E)
    o = o @ wo_t + bo
    y = o + x
    mean = jnp.mean(y, axis=-1, keepdims=True)
    var = jnp.mean((y - mean) ** 2, axis=-1, keepdims=True)
    y = (y - mean) / jnp.sqrt(var + 1e-5)
    return y * gamma + beta


def make_params(key, embed_dim):
    """Synthetic params matching nn.MultiheadAttention + LayerNorm layout,
    with QKV weights/biases pre-fused into (E, 3E) / (1, 3E)."""
    E = embed_dim
    ks = jax.random.split(key, 6)
    in_proj_w = jax.random.normal(ks[0], (3 * E, E), jnp.float32) * 0.1
    in_proj_b = jax.random.normal(ks[1], (3 * E,), jnp.float32) * 0.1
    wqkv_t = in_proj_w.T                          # columns = [Wq^T | Wk^T | Wv^T]
    bqkv = in_proj_b.reshape(1, 3 * E)
    wo_t = (jax.random.normal(ks[2], (E, E), jnp.float32) * 0.1).T
    bo = (jax.random.normal(ks[3], (E,), jnp.float32) * 0.1).reshape(1, E)
    gamma = (jnp.ones((E,), jnp.float32)
             + 0.01 * jax.random.normal(ks[4], (E,), jnp.float32)).reshape(1, E)
    beta = (0.01 * jax.random.normal(ks[5], (E,), jnp.float32)).reshape(1, E)
    return (wqkv_t, bqkv, wo_t, bo, gamma, beta)


if __name__ == "__main__":
    batch, seq, embed_dim, num_heads = 8, 8, 32, 4
    dropout_rate = 0.1  # unused at inference (dropout == identity)

    key = jax.random.PRNGKey(0)
    k_x, k_p = jax.random.split(key)
    x = jax.random.normal(k_x, (batch, seq, embed_dim), jnp.float32)
    params = make_params(k_p, embed_dim)

    out = jax.block_until_ready(residual_block_pallas(x, params, num_heads))
    ref = residual_block_reference(x, params, num_heads)

    assert out.shape == (batch, seq, embed_dim)
    # bf16 MXU inputs + approx reciprocal -> loosened tolerance vs f32 reference.
    assert jnp.allclose(out, ref, atol=3e-2, rtol=3e-2), "mismatch vs reference"

    print("KERNEL_OK")
</pallas_src>

<mosaic_0001>
module attributes {stable_mosaic.version = 11 : i64} {
  func.func @residual_block_kernel(%arg0: i32, %arg1: memref<4x8x32xbf16, #tpu.memory_space<vmem>>, %arg2: memref<32x96xbf16, #tpu.memory_space<vmem>>, %arg3: memref<1x96xf32, #tpu.memory_space<vmem>>, %arg4: memref<32x32xbf16, #tpu.memory_space<vmem>>, %arg5: memref<1x32xf32, #tpu.memory_space<vmem>>, %arg6: memref<1x32xf32, #tpu.memory_space<vmem>>, %arg7: memref<1x32xf32, #tpu.memory_space<vmem>>, %arg8: memref<4x8x32xf32, #tpu.memory_space<vmem>>, %arg9: memref<32x32xf32, #tpu.memory_space<vmem>>) attributes {dimension_semantics = [#tpu.dimension_semantics<parallel>], iteration_bounds = array<i64: 2>, scalar_prefetch = 0 : i64, scratch_operands = 1 : i64, tpu.core_type = #tpu.core_type<tc>, window_params = [{transform_indices = @transform_0, window_bounds = array<i64: 4, 8, 32>}, {pipeline_mode = #tpu.pipeline_mode<synchronous>, transform_indices = @transform_1, window_bounds = array<i64: 32, 96>}, {pipeline_mode = #tpu.pipeline_mode<synchronous>, transform_indices = @transform_2, window_bounds = array<i64: 1, 96>}, {pipeline_mode = #tpu.pipeline_mode<synchronous>, transform_indices = @transform_3, window_bounds = array<i64: 32, 32>}, {pipeline_mode = #tpu.pipeline_mode<synchronous>, transform_indices = @transform_4, window_bounds = array<i64: 1, 32>}, {pipeline_mode = #tpu.pipeline_mode<synchronous>, transform_indices = @transform_5, window_bounds = array<i64: 1, 32>}, {pipeline_mode = #tpu.pipeline_mode<synchronous>, transform_indices = @transform_6, window_bounds = array<i64: 1, 32>}, {transform_indices = @transform_7, window_bounds = array<i64: 4, 8, 32>}]} {
    %c0 = arith.constant 0 : index
    %c0_0 = arith.constant 0 : index
    %c0_1 = arith.constant 0 : index
    %0 = vector.load %arg1[%c0, %c0_0, %c0_1] : memref<4x8x32xbf16, #tpu.memory_space<vmem>>, vector<4x8x32xbf16>
    %1 = vector.shape_cast %0 : vector<4x8x32xbf16> to vector<32x32xbf16>
    %c0_2 = arith.constant 0 : index
    %c0_3 = arith.constant 0 : index
    %2 = vector.load %arg2[%c0_2, %c0_3] : memref<32x96xbf16, #tpu.memory_space<vmem>>, vector<32x96xbf16>
    %cst = arith.constant dense<0.000000e+00> : vector<32x96xf32>
    %3 = tpu.matmul %1, %2, %cst {dimension_numbers = #tpu.dot_dimension_numbers<[1], [0], [0], [1], [0, 0, 1, 1], [], []>} : vector<32x32xbf16>, vector<32x96xbf16>, vector<32x96xf32> -> vector<32x96xf32>
    %c0_4 = arith.constant 0 : index
    %c0_5 = arith.constant 0 : index
    %4 = vector.load %arg3[%c0_4, %c0_5] : memref<1x96xf32, #tpu.memory_space<vmem>>, vector<1x96xf32>
    %5 = vector.broadcast %4 : vector<1x96xf32> to vector<32x96xf32>
    %6 = arith.addf %3, %5 : vector<32x96xf32>
    %7 = vector.extract_strided_slice %6 {offsets = [0, 0], sizes = [32, 32], strides = [1, 1]} : vector<32x96xf32> to vector<32x32xf32>
    %8 = arith.truncf %7 : vector<32x32xf32> to vector<32x32xbf16>
    %9 = vector.shape_cast %8 : vector<32x32xbf16> to vector<4x8x32xbf16>
    %10 = vector.extract_strided_slice %6 {offsets = [0, 32], sizes = [32, 32], strides = [1, 1]} : vector<32x96xf32> to vector<32x32xf32>
    %11 = arith.truncf %10 : vector<32x32xf32> to vector<32x32xbf16>
    %12 = vector.shape_cast %11 : vector<32x32xbf16> to vector<4x8x32xbf16>
    %13 = vector.extract_strided_slice %6 {offsets = [0, 64], sizes = [32, 32], strides = [1, 1]} : vector<32x96xf32> to vector<32x32xf32>
    %14 = arith.truncf %13 : vector<32x32xf32> to vector<32x32xbf16>
    %15 = vector.shape_cast %14 : vector<32x32xbf16> to vector<4x8x32xbf16>
    %16 = vector.extract_strided_slice %9 {offsets = [0, 0, 0], sizes = [4, 8, 8], strides = [1, 1, 1]} : vector<4x8x32xbf16> to vector<4x8x8xbf16>
    %17 = vector.extract_strided_slice %12 {offsets = [0, 0, 0], sizes = [4, 8, 8], strides = [1, 1, 1]} : vector<4x8x32xbf16> to vector<4x8x8xbf16>
    %18 = vector.extract_strided_slice %15 {offsets = [0, 0, 0], sizes = [4, 8, 8], strides = [1, 1, 1]} : vector<4x8x32xbf16> to vector<4x8x8xbf16>
    "tpu.trace_start"() <{level = 10 : i32, message = "bqd,bkd->bqk"}> : () -> ()
    %cst_6 = arith.constant dense<0.000000e+00> : vector<4x8x8xf32>
    %19 = tpu.matmul %16, %17, %cst_6 {dimension_numbers = #tpu.dot_dimension_numbers<[2], [2], [1], [1], [0, 0, 0, 1, 1, 1], [0], [0]>} : vector<4x8x8xbf16>, vector<4x8x8xbf16>, vector<4x8x8xf32> -> vector<4x8x8xf32>
    "tpu.trace_stop"() : () -> ()
    %cst_7 = arith.constant 0.353553385 : f32
    %20 = vector.broadcast %cst_7 : f32 to vector<4x8x8xf32>
    %21 = arith.mulf %19, %20 : vector<4x8x8xf32>
    %cst_8 = arith.constant dense<0xFF800000> : vector<4x8xf32>
    %22 = vector.multi_reduction <maximumf>, %21, %cst_8 [2] : vector<4x8x8xf32> to vector<4x8xf32>
    %23 = vector.shape_cast %22 : vector<4x8xf32> to vector<4x8x1xf32>
    %24 = vector.broadcast %23 : vector<4x8x1xf32> to vector<4x8x8xf32>
    %25 = arith.subf %21, %24 : vector<4x8x8xf32>
    %26 = math.exp %25 : vector<4x8x8xf32>
    %cst_9 = arith.constant dense<0.000000e+00> : vector<4x8xf32>
    %27 = vector.multi_reduction <add>, %26, %cst_9 [2] : vector<4x8x8xf32> to vector<4x8xf32>
    %28 = vector.shape_cast %27 : vector<4x8xf32> to vector<4x8x1xf32>
    %29 = tpu.reciprocal %28 {approx = true} : vector<4x8x1xf32> -> vector<4x8x1xf32>
    %30 = vector.broadcast %29 : vector<4x8x1xf32> to vector<4x8x8xf32>
    %31 = arith.mulf %26, %30 : vector<4x8x8xf32>
    %32 = arith.truncf %31 : vector<4x8x8xf32> to vector<4x8x8xbf16>
    "tpu.trace_start"() <{level = 10 : i32, message = "bqk,bkd->bqd"}> : () -> ()
    %cst_10 = arith.constant dense<0.000000e+00> : vector<4x8x8xf32>
    %33 = tpu.matmul %32, %18, %cst_10 {dimension_numbers = #tpu.dot_dimension_numbers<[2], [1], [1], [2], [0, 0, 0, 1, 1, 2], [0], [0]>} : vector<4x8x8xbf16>, vector<4x8x8xbf16>, vector<4x8x8xf32> -> vector<4x8x8xf32>
    "tpu.trace_stop"() : () -> ()
    %34 = vector.shape_cast %33 : vector<4x8x8xf32> to vector<32x8xf32>
    %c0_11 = arith.constant 0 : index
    %c0_12 = arith.constant 0 : index
    %35 = vector.load %arg9[%c0_11, %c0_12] : memref<32x32xf32, #tpu.memory_space<vmem>>, vector<32x8xf32>
    tpu.vector_store %arg9[%c0_11, %c0_12], %34 {strides = array<i32>} : memref<32x32xf32, #tpu.memory_space<vmem>>, vector<32x8xf32>,
    %36 = vector.extract_strided_slice %9 {offsets = [0, 0, 8], sizes = [4, 8, 8], strides = [1, 1, 1]} : vector<4x8x32xbf16> to vector<4x8x8xbf16>
    %37 = vector.extract_strided_slice %12 {offsets = [0, 0, 8], sizes = [4, 8, 8], strides = [1, 1, 1]} : vector<4x8x32xbf16> to vector<4x8x8xbf16>
    %38 = vector.extract_strided_slice %15 {offsets = [0, 0, 8], sizes = [4, 8, 8], strides = [1, 1, 1]} : vector<4x8x32xbf16> to vector<4x8x8xbf16>
    "tpu.trace_start"() <{level = 10 : i32, message = "bqd,bkd->bqk"}> : () -> ()
    %cst_13 = arith.constant dense<0.000000e+00> : vector<4x8x8xf32>
    %39 = tpu.matmul %36, %37, %cst_13 {dimension_numbers = #tpu.dot_dimension_numbers<[2], [2], [1], [1], [0, 0, 0, 1, 1, 1], [0], [0]>} : vector<4x8x8xbf16>, vector<4x8x8xbf16>, vector<4x8x8xf32> -> vector<4x8x8xf32>
    "tpu.trace_stop"() : () -> ()
    %cst_14 = arith.constant 0.353553385 : f32
    %40 = vector.broadcast %cst_14 : f32 to vector<4x8x8xf32>
    %41 = arith.mulf %39, %40 : vector<4x8x8xf32>
    %cst_15 = arith.constant dense<0xFF800000> : vector<4x8xf32>
    %42 = vector.multi_reduction <maximumf>, %41, %cst_15 [2] : vector<4x8x8xf32> to vector<4x8xf32>
    %43 = vector.shape_cast %42 : vector<4x8xf32> to vector<4x8x1xf32>
    %44 = vector.broadcast %43 : vector<4x8x1xf32> to vector<4x8x8xf32>
    %45 = arith.subf %41, %44 : vector<4x8x8xf32>
    %46 = math.exp %45 : vector<4x8x8xf32>
    %cst_16 = arith.constant dense<0.000000e+00> : vector<4x8xf32>
    %47 = vector.multi_reduction <add>, %46, %cst_16 [2] : vector<4x8x8xf32> to vector<4x8xf32>
    %48 = vector.shape_cast %47 : vector<4x8xf32> to vector<4x8x1xf32>
    %49 = tpu.reciprocal %48 {approx = true} : vector<4x8x1xf32> -> vector<4x8x1xf32>
    %50 = vector.broadcast %49 : vector<4x8x1xf32> to vector<4x8x8xf32>
    %51 = arith.mulf %46, %50 : vector<4x8x8xf32>
    %52 = arith.truncf %51 : vector<4x8x8xf32> to vector<4x8x8xbf16>
    "tpu.trace_start"() <{level = 10 : i32, message = "bqk,bkd->bqd"}> : () -> ()
    %cst_17 = arith.constant dense<0.000000e+00> : vector<4x8x8xf32>
    %53 = tpu.matmul %52, %38, %cst_17 {dimension_numbers = #tpu.dot_dimension_numbers<[2], [1], [1], [2], [0, 0, 0, 1, 1, 2], [0], [0]>} : vector<4x8x8xbf16>, vector<4x8x8xbf16>, vector<4x8x8xf32> -> vector<4x8x8xf32>
    "tpu.trace_stop"() : () -> ()
    %54 = vector.shape_cast %53 : vector<4x8x8xf32> to vector<32x8xf32>
    %c0_18 = arith.constant 0 : index
    %c8 = arith.constant 8 : index
    %55 = vector.load %arg9[%c0_18, %c8] : memref<32x32xf32, #tpu.memory_space<vmem>>, vector<32x8xf32>
    tpu.vector_store %arg9[%c0_18, %c8], %54 {strides = array<i32>} : memref<32x32xf32, #tpu.memory_space<vmem>>, vector<32x8xf32>,
    %56 = vector.extract_strided_slice %9 {offsets = [0, 0, 16], sizes = [4, 8, 8], strides = [1, 1, 1]} : vector<4x8x32xbf16> to vector<4x8x8xbf16>
    %57 = vector.extract_strided_slice %12 {offsets = [0, 0, 16], sizes = [4, 8, 8], strides = [1, 1, 1]} : vector<4x8x32xbf16> to vector<4x8x8xbf16>
    %58 = vector.extract_strided_slice %15 {offsets = [0, 0, 16], sizes = [4, 8, 8], strides = [1, 1, 1]} : vector<4x8x32xbf16> to vector<4x8x8xbf16>
    "tpu.trace_start"() <{level = 10 : i32, message = "bqd,bkd->bqk"}> : () -> ()
    %cst_19 = arith.constant dense<0.000000e+00> : vector<4x8x8xf32>
    %59 = tpu.matmul %56, %57, %cst_19 {dimension_numbers = #tpu.dot_dimension_numbers<[2], [2], [1], [1], [0, 0, 0, 1, 1, 1], [0], [0]>} : vector<4x8x8xbf16>, vector<4x8x8xbf16>, vector<4x8x8xf32> -> vector<4x8x8xf32>
    "tpu.trace_stop"() : () -> ()
    %cst_20 = arith.constant 0.353553385 : f32
    %60 = vector.broadcast %cst_20 : f32 to vector<4x8x8xf32>
    %61 = arith.mulf %59, %60 : vector<4x8x8xf32>
    %cst_21 = arith.constant dense<0xFF800000> : vector<4x8xf32>
    %62 = vector.multi_reduction <maximumf>, %61, %cst_21 [2] : vector<4x8x8xf32> to vector<4x8xf32>
    %63 = vector.shape_cast %62 : vector<4x8xf32> to vector<4x8x1xf32>
    %64 = vector.broadcast %63 : vector<4x8x1xf32> to vector<4x8x8xf32>
    %65 = arith.subf %61, %64 : vector<4x8x8xf32>
    %66 = math.exp %65 : vector<4x8x8xf32>
    %cst_22 = arith.constant dense<0.000000e+00> : vector<4x8xf32>
    %67 = vector.multi_reduction <add>, %66, %cst_22 [2] : vector<4x8x8xf32> to vector<4x8xf32>
    %68 = vector.shape_cast %67 : vector<4x8xf32> to vector<4x8x1xf32>
    %69 = tpu.reciprocal %68 {approx = true} : vector<4x8x1xf32> -> vector<4x8x1xf32>
    %70 = vector.broadcast %69 : vector<4x8x1xf32> to vector<4x8x8xf32>
    %71 = arith.mulf %66, %70 : vector<4x8x8xf32>
    %72 = arith.truncf %71 : vector<4x8x8xf32> to vector<4x8x8xbf16>
    "tpu.trace_start"() <{level = 10 : i32, message = "bqk,bkd->bqd"}> : () -> ()
    %cst_23 = arith.constant dense<0.000000e+00> : vector<4x8x8xf32>
    %73 = tpu.matmul %72, %58, %cst_23 {dimension_numbers = #tpu.dot_dimension_numbers<[2], [1], [1], [2], [0, 0, 0, 1, 1, 2], [0], [0]>} : vector<4x8x8xbf16>, vector<4x8x8xbf16>, vector<4x8x8xf32> -> vector<4x8x8xf32>
    "tpu.trace_stop"() : () -> ()
    %74 = vector.shape_cast %73 : vector<4x8x8xf32> to vector<32x8xf32>
    %c0_24 = arith.constant 0 : index
    %c16 = arith.constant 16 : index
    %75 = vector.load %arg9[%c0_24, %c16] : memref<32x32xf32, #tpu.memory_space<vmem>>, vector<32x8xf32>
    tpu.vector_store %arg9[%c0_24, %c16], %74 {strides = array<i32>} : memref<32x32xf32, #tpu.memory_space<vmem>>, vector<32x8xf32>,
    %76 = vector.extract_strided_slice %9 {offsets = [0, 0, 24], sizes = [4, 8, 8], strides = [1, 1, 1]} : vector<4x8x32xbf16> to vector<4x8x8xbf16>
    %77 = vector.extract_strided_slice %12 {offsets = [0, 0, 24], sizes = [4, 8, 8], strides = [1, 1, 1]} : vector<4x8x32xbf16> to vector<4x8x8xbf16>
    %78 = vector.extract_strided_slice %15 {offsets = [0, 0, 24], sizes = [4, 8, 8], strides = [1, 1, 1]} : vector<4x8x32xbf16> to vector<4x8x8xbf16>
    "tpu.trace_start"() <{level = 10 : i32, message = "bqd,bkd->bqk"}> : () -> ()
    %cst_25 = arith.constant dense<0.000000e+00> : vector<4x8x8xf32>
    %79 = tpu.matmul %76, %77, %cst_25 {dimension_numbers = #tpu.dot_dimension_numbers<[2], [2], [1], [1], [0, 0, 0, 1, 1, 1], [0], [0]>} : vector<4x8x8xbf16>, vector<4x8x8xbf16>, vector<4x8x8xf32> -> vector<4x8x8xf32>
    "tpu.trace_stop"() : () -> ()
    %cst_26 = arith.constant 0.353553385 : f32
    %80 = vector.broadcast %cst_26 : f32 to vector<4x8x8xf32>
    %81 = arith.mulf %79, %80 : vector<4x8x8xf32>
    %cst_27 = arith.constant dense<0xFF800000> : vector<4x8xf32>
    %82 = vector.multi_reduction <maximumf>, %81, %cst_27 [2] : vector<4x8x8xf32> to vector<4x8xf32>
    %83 = vector.shape_cast %82 : vector<4x8xf32> to vector<4x8x1xf32>
    %84 = vector.broadcast %83 : vector<4x8x1xf32> to vector<4x8x8xf32>
    %85 = arith.subf %81, %84 : vector<4x8x8xf32>
    %86 = math.exp %85 : vector<4x8x8xf32>
    %cst_28 = arith.constant dense<0.000000e+00> : vector<4x8xf32>
    %87 = vector.multi_reduction <add>, %86, %cst_28 [2] : vector<4x8x8xf32> to vector<4x8xf32>
    %88 = vector.shape_cast %87 : vector<4x8xf32> to vector<4x8x1xf32>
    %89 = tpu.reciprocal %88 {approx = true} : vector<4x8x1xf32> -> vector<4x8x1xf32>
    %90 = vector.broadcast %89 : vector<4x8x1xf32> to vector<4x8x8xf32>
    %91 = arith.mulf %86, %90 : vector<4x8x8xf32>
    %92 = arith.truncf %91 : vector<4x8x8xf32> to vector<4x8x8xbf16>
    "tpu.trace_start"() <{level = 10 : i32, message = "bqk,bkd->bqd"}> : () -> ()
    %cst_29 = arith.constant dense<0.000000e+00> : vector<4x8x8xf32>
    %93 = tpu.matmul %92, %78, %cst_29 {dimension_numbers = #tpu.dot_dimension_numbers<[2], [1], [1], [2], [0, 0, 0, 1, 1, 2], [0], [0]>} : vector<4x8x8xbf16>, vector<4x8x8xbf16>, vector<4x8x8xf32> -> vector<4x8x8xf32>
    "tpu.trace_stop"() : () -> ()
    %94 = vector.shape_cast %93 : vector<4x8x8xf32> to vector<32x8xf32>
    %c0_30 = arith.constant 0 : index
    %c24 = arith.constant 24 : index
    %95 = vector.load %arg9[%c0_30, %c24] : memref<32x32xf32, #tpu.memory_space<vmem>>, vector<32x8xf32>
    tpu.vector_store %arg9[%c0_30, %c24], %94 {strides = array<i32>} : memref<32x32xf32, #tpu.memory_space<vmem>>, vector<32x8xf32>,
    %c0_31 = arith.constant 0 : index
    %c0_32 = arith.constant 0 : index
    %96 = vector.load %arg9[%c0_31, %c0_32] : memref<32x32xf32, #tpu.memory_space<vmem>>, vector<32x32xf32>
    %97 = arith.truncf %96 : vector<32x32xf32> to vector<32x32xbf16>
    %c0_33 = arith.constant 0 : index
    %c0_34 = arith.constant 0 : index
    %98 = vector.load %arg4[%c0_33, %c0_34] : memref<32x32xbf16, #tpu.memory_space<vmem>>, vector<32x32xbf16>
    %cst_35 = arith.constant dense<0.000000e+00> : vector<32x32xf32>
    %99 = tpu.matmul %97, %98, %cst_35 {dimension_numbers = #tpu.dot_dimension_numbers<[1], [0], [0], [1], [0, 0, 1, 1], [], []>} : vector<32x32xbf16>, vector<32x32xbf16>, vector<32x32xf32> -> vector<32x32xf32>
    %c0_36 = arith.constant 0 : index
    %c0_37 = arith.constant 0 : index
    %100 = vector.load %arg5[%c0_36, %c0_37] : memref<1x32xf32, #tpu.memory_space<vmem>>, vector<1x32xf32>
    %101 = vector.broadcast %100 : vector<1x32xf32> to vector<32x32xf32>
    %102 = arith.addf %99, %101 : vector<32x32xf32>
    %103 = arith.extf %1 : vector<32x32xbf16> to vector<32x32xf32>
    %104 = arith.addf %102, %103 : vector<32x32xf32>
    %cst_38 = arith.constant dense<0.000000e+00> : vector<32xf32>
    %105 = vector.multi_reduction <add>, %104, %cst_38 [1] : vector<32x32xf32> to vector<32xf32>
    %106 = vector.shape_cast %105 : vector<32xf32> to vector<32x1xf32>
    %cst_39 = arith.constant 3.200000e+01 : f32
    %107 = vector.broadcast %cst_39 : f32 to vector<32x1xf32>
    %108 = arith.divf %106, %107 : vector<32x1xf32>
    %109 = vector.broadcast %108 : vector<32x1xf32> to vector<32x32xf32>
    %110 = arith.subf %104, %109 : vector<32x32xf32>
    %111 = vector.broadcast %108 : vector<32x1xf32> to vector<32x32xf32>
    %112 = arith.subf %104, %111 : vector<32x32xf32>
    %113 = arith.mulf %110, %112 : vector<32x32xf32>
    %cst_40 = arith.constant dense<0.000000e+00> : vector<32xf32>
    %114 = vector.multi_reduction <add>, %113, %cst_40 [1] : vector<32x32xf32> to vector<32xf32>
    %115 = vector.shape_cast %114 : vector<32xf32> to vector<32x1xf32>
    %cst_41 = arith.constant 3.200000e+01 : f32
    %116 = vector.broadcast %cst_41 : f32 to vector<32x1xf32>
    %117 = arith.divf %115, %116 : vector<32x1xf32>
    %118 = vector.broadcast %108 : vector<32x1xf32> to vector<32x32xf32>
    %119 = arith.subf %104, %118 : vector<32x32xf32>
    %cst_42 = arith.constant 9.99999974E-6 : f32
    %120 = vector.broadcast %cst_42 : f32 to vector<32x1xf32>
    %121 = arith.addf %117, %120 : vector<32x1xf32>
    %122 = math.rsqrt %121 : vector<32x1xf32>
    %123 = vector.broadcast %122 : vector<32x1xf32> to vector<32x32xf32>
    %124 = arith.mulf %119, %123 : vector<32x32xf32>
    %c0_43 = arith.constant 0 : index
    %c0_44 = arith.constant 0 : index
    %125 = vector.load %arg6[%c0_43, %c0_44] : memref<1x32xf32, #tpu.memory_space<vmem>>, vector<1x32xf32>
    %126 = vector.broadcast %125 : vector<1x32xf32> to vector<32x32xf32>
    %127 = arith.mulf %124, %126 : vector<32x32xf32>
    %c0_45 = arith.constant 0 : index
    %c0_46 = arith.constant 0 : index
    %128 = vector.load %arg7[%c0_45, %c0_46] : memref<1x32xf32, #tpu.memory_space<vmem>>, vector<1x32xf32>
    %129 = vector.broadcast %128 : vector<1x32xf32> to vector<32x32xf32>
    %130 = arith.addf %127, %129 : vector<32x32xf32>
    %131 = vector.shape_cast %130 : vector<32x32xf32> to vector<4x8x32xf32>
    %c0_47 = arith.constant 0 : index
    %c0_48 = arith.constant 0 : index
    %c0_49 = arith.constant 0 : index
    %132 = vector.load %arg8[%c0_47, %c0_48, %c0_49] : memref<4x8x32xf32, #tpu.memory_space<vmem>>, vector<4x8x32xf32>
    tpu.vector_store %arg8[%c0_47, %c0_48, %c0_49], %131 {strides = array<i32>} : memref<4x8x32xf32, #tpu.memory_space<vmem>>, vector<4x8x32xf32>,
    return
  }
  func.func @transform_0(%arg0: i32) -> (i32, i32, i32) {
    %c0_i32 = arith.constant 0 : i32
    %c0_i32_0 = arith.constant 0 : i32
    %c0_i32_1 = arith.constant 0 : i32
    return %arg0, %c0_i32, %c0_i32_0 : i32, i32, i32
  }
  func.func @transform_1(%arg0: i32) -> (i32, i32) {
    %c0_i32 = arith.constant 0 : i32
    %c0_i32_0 = arith.constant 0 : i32
    %c0_i32_1 = arith.constant 0 : i32
    return %c0_i32, %c0_i32_0 : i32, i32
  }
  func.func @transform_2(%arg0: i32) -> (i32, i32) {
    %c0_i32 = arith.constant 0 : i32
    %c0_i32_0 = arith.constant 0 : i32
    %c0_i32_1 = arith.constant 0 : i32
    return %c0_i32, %c0_i32_0 : i32, i32
  }
  func.func @transform_3(%arg0: i32) -> (i32, i32) {
    %c0_i32 = arith.constant 0 : i32
    %c0_i32_0 = arith.constant 0 : i32
    %c0_i32_1 = arith.constant 0 : i32
    return %c0_i32, %c0_i32_0 : i32, i32
  }
  func.func @transform_4(%arg0: i32) -> (i32, i32) {
    %c0_i32 = arith.constant 0 : i32
    %c0_i32_0 = arith.constant 0 : i32
    %c0_i32_1 = arith.constant 0 : i32
    return %c0_i32, %c0_i32_0 : i32, i32
  }
  func.func @transform_5(%arg0: i32) -> (i32, i32) {
    %c0_i32 = arith.constant 0 : i32
    %c0_i32_0 = arith.constant 0 : i32
    %c0_i32_1 = arith.constant 0 : i32
    return %c0_i32, %c0_i32_0 : i32, i32
  }
  func.func @transform_6(%arg0: i32) -> (i32, i32) {
    %c0_i32 = arith.constant 0 : i32
    %c0_i32_0 = arith.constant 0 : i32
    %c0_i32_1 = arith.constant 0 : i32
    return %c0_i32, %c0_i32_0 : i32, i32
  }
  func.func @transform_7(%arg0: i32) -> (i32, i32, i32) {
    %c0_i32 = arith.constant 0 : i32
    %c0_i32_0 = arith.constant 0 : i32
    %c0_i32_1 = arith.constant 0 : i32
    return %arg0, %c0_i32, %c0_i32_0 : i32, i32, i32
  }
}

</mosaic_0001>

<bundles_post_ra>
// kernel: tpu_custom_call.1
= control target key start
LH: loop header
LB: loop body
LE: loop exit
PB: predicated region body
PF: predicated region fallthrough
CT: control target
= control target key end

     0   :  { %s2567_s0 = inlined_call_operand.hbm [shape: bf16[8,8,32], index: 0, kind: input, shape index: {}]   ;;  %s2568_s1 = inlined_call_operand.hbm [shape: bf16[32,96], index: 1, kind: input, shape index: {}]   ;;  %s2569_s2 = inlined_call_operand.vmem [shape: f32[1,96], index: 2, kind: input, shape index: {}]   ;;  %s2570_s3 = inlined_call_operand.hbm [shape: bf16[32,32], index: 3, kind: input, shape index: {}]   ;;  %s2571_s4 = inlined_call_operand.vmem [shape: f32[1,32], index: 4, kind: input, shape index: {}]   ;;  %s2572_s5 = inlined_call_operand.vmem [shape: f32[1,32], index: 5, kind: input, shape index: {}]   ;;  %s2573_s6 = inlined_call_operand.vmem [shape: f32[1,32], index: 6, kind: input, shape index: {}]   ;;  %s2574_s7 = inlined_call_operand.hbm [shape: f32[8,8,32], index: 7, kind: output, shape index: {}]  }
   0x1   :  { %2577 = sst [smem:[#allocation13_spill]] %s2568_s1 }
   0x2   :  { %12 = vsyncpa [#allocation4], 0 }
   0x3   :  { %14 = vsyncpa [#allocation4 + $0x1], 0 }
   0x4   :  { %15 = vsyncpa [#allocation7], 0 }
   0x5   :  { %16 = vsyncpa [#allocation5], 0 }
   0x6   :  { %18 = vsyncpa [#allocation5 + $0x1], 0  ;;  %s2137_s24 = smov 0   ;;  %s2139_s25 = smov 0  }
   0x7   :  { %s2141_s26 = smov 0   ;;  %s2143_s27 = smov 0  }
   0x8 LB: > { %s2158_s28 = sadd.s32 4294967295, %s2075_s27   ;;  %s1666_s29 = sadd.s32 4294967294, %s2075_s27   ;;  %s2075_s27 = sphi %s2143_s27, %s2590_s27   ;;  %s2071_s26 = sphi %s2141_s26, %s2589_s26   ;;  %s2067_s25 = sphi %s2139_s25, %s2588_s25   ;;  %s2063_s24 = sphi %s2137_s24, %s2587_s24  }
   0x9   : > { %p44_p0 = scmp.ne.s32.totalorder %s2067_s25, %s2063_s24  ;;  %p45_p1 = scmp.eq.s32.totalorder %s2158_s28, 0 }
   0xa   : > { %p194_p2 = scmp.eq.s32.totalorder %s2158_s28, 1  ;;  %p200_p3 = scmp.eq.s32.totalorder %s1666_s29, 1 }
   0xb   : > { %p2167_p4 = por %p45_p1, %p44_p0  ;;  %p1667_p5 = scmp.ge.s32.totalorder %s2075_s27, 1 }
   0xc   : > { %p2172_p6 = por %p200_p3, %p44_p0  ;;  %p207_p7 = scmp.lt.s32.totalorder %s2075_s27, 3 }
   0xd   : > { %s2580_s1 = sld [smem:[#allocation13_spill]]  ;;  %s2077_s13 = smov [#allocation6]  }
   0xe   : > { %p2180_p8 = pnand %p1667_p5, %p207_p7  ;;  %s220_s14 = sshll.u32 %s2077_s13, 4  ;;  %s221_s14 = int_to_ptr.vmem [resolvable:$true] %s220_s14 }
   0xf   : > { %s235_s17 = sshll.u32 %s2570_s3, 4  ;;  %s2575_s18 = smov 64   ;;  %s236_s17 = int_to_ptr.hbm [resolvable:$true] %s235_s17 }
  0x10   : > { %p1764_p9 = pneg %p2180_p8  ;;  %s2576_s19 = smov 4  }
  0x11   : > { %s2080_s20 = smov [#allocation8]   ;;  %s2199_s22 = sadd.s32 1, %s2075_s27  }
  0x12   : > { %p1765_p10 = pnand %p1764_p9, %p45_p1  ;;  %s237_s21 = sshll.u32 %s2080_s20, 4  ;;  %s238_s21 = int_to_ptr.vmem [resolvable:$true] %s237_s21 }
  0x13   : > { %s218_s11 = sshll.u32 %s2580_s1, 4  ;;  %s31_s23 = sadd.s32 1, %s2071_s26  ;;  %s219_s11 = int_to_ptr.hbm [resolvable:$true] %s218_s11 }
  0x14   : > { %1767 = dma.hbm_to_vmem [thread:$0]  (!%p1765_p10), %s219_s11, 256, %s221_s14, [#allocation7], %s2575_s18, %s2575_s18, %s2576_s19  }
  0x15   : > { %1770 = dma.hbm_to_vmem [thread:$0]  (!%p1765_p10), %s236_s17, 256, %s238_s21, [#allocation7], %s2575_s18, %s2575_s18, %s2576_s19  }
  0x16   : > { %s28_s29 = ssub.s32 %s2075_s27, %s2199_s22  ;;  %p38_p12 = scmp.ne.s32.totalorder %s2071_s26, %s2067_s25 }
  0x17   : > { %p29_p13 = scmp.eq.s32.totalorder %s28_s29, 0  ;;  %p39_p0 = scmp.eq.s32.totalorder %s2075_s27, 0 }
  0x18   : > { %p2209_p3 = por %p194_p2, %p38_p12  ;;  %p1781_p5 = scmp.lt.s32.totalorder %s2075_s27, 2 }
  0x19   : > { %s2215_s10 = scalar_select %p29_p13, %s2071_s26, %s31_s23  }
  0x1a   : > { %p40_p7 = por %p39_p0, %p38_p12  ;;  %s260_s11 = sand.u32 1, %s2071_s26  }
  0x1b   : > { %s1671_s13 = sshll.u32 %s260_s11, 4  ;;  %s1744_s14 = sshll.u32 %s2075_s27, 4 }
  0x1c   : > { %s269_s17 = scalar_lea.hbm %s2567_s0, %s1744_s14  ;;  %s264_s20 = scalar_lea.vmem [#allocation3], %s1671_s13 }
  0x1d   : > { %s272_s21 = sshll.u32 %s264_s20, 4  ;;  %s270_s29 = sshll.u32 %s269_s17, 4  ;;  %s273_s21 = int_to_ptr.vmem [resolvable:$true] %s272_s21  ;;  %s271_s29 = int_to_ptr.hbm [resolvable:$true] %s270_s29 }
  0x1e   : > { %p2222_p2 = pnand %p1781_p5, %p40_p7  ;;  %s261_s23 = scalar_lea.sflag [#allocation4], %s260_s11 }
  0x1f   : > { %s1975_s19 = sshra.s32 %s271_s29, 4  ;;  %s1982_s15 = scalar_lea.hbm %s2567_s0, 32  ;;  %s1976_s19 = int_to_ptr.hbm [resolvable:$true] %s1975_s19 }
  0x20   : > { %s1977_s1 = scalar_lea.hbm %s1976_s19, 16  ;;  %p1979_p10 = pneg %p2222_p2 }
  0x21   : > { %p1978_p9 = scmp.ne.s32.totalorder %s1976_s19, %s1977_s1  ;;  %p1983_p0 = scmp.lt.s32.totalorder %s1976_s19, %s2567_s0 }
  0x22   : > { %p1984_p5 = scmp.lt.s32.totalorder %s1982_s15, %s1977_s1 }
  0x23   : > { %p1980_p12 = pnand %p1979_p10, %p1978_p9 }
  0x24   : > { %p1985_p7 = por %p1984_p5, %p1983_p0 }
  0x25   : > { %p1981_p13 = pneg %p1980_p12 }
  0x27   : > { %p1986_p11 = pnand %p1985_p7, %p1981_p13 }
  0x29   : > { %1989 = shalt.err (!%p1986_p11)
}
  0x2a   : > { %s2584_s11 = smov 4   ;;  %s2585_s20 = smov 64  }
  0x2b   : > { %1774 = dma.hbm_to_vmem [thread:$0]  (!%p2222_p2), %s271_s29, 256, %s273_s21, %s261_s23, %s2585_s20, %s2585_s20, %s2584_s11  }
  0x2c   : > { %284 = sbr.rel (%p2180_p8) target bundleno = 2697 (0xa89), region = 48  ;;  %s2242_s14 = sand.u32 (!%p2180_p8), 1, %s2067_s25  }
  0x2d   : > { %s1675_s19 = sshll.u32 (!%p2180_p8), %s2242_s14, 4  ;;  %s287_s1 = scalar_lea.sflag (!%p2180_p8), [#allocation4], %s2242_s14 }
  0x2e   : > { %s2246_s13 = scalar_lea.vmem (!%p2180_p8), [#allocation3], %s1675_s19 }
  0x31   : > { %2050 = dma.done.wait (%p2167_p4), %s287_s1, 256  }
  0x32   : > { %2052 = vsyncadd (%p2167_p4), %s287_s1, 4294967040 }
  0x33   : > { %2054 = dma.done.wait (%p45_p1), [#allocation7], 512  }
  0x34   : > { %2056 = vsyncadd (%p45_p1), [#allocation7], 4294966784  ;;  %v1748_v0 = vld [vmem:[#allocation6 + $0x8] sm:$0xff]  ;;  %v1747_v1 = vld [vmem:[#allocation6] sm:$0xff]  ;;  %vm369_vm0 = vcmask 261120   ;;  %s2081_s18 = smov 64  }
  0x35   : > { %382 = vmatpush.bf16.msra.mxu0 %v1748_v0  ;;  %v1745_v2 = vld [vmem:[%s2246_s13] sm:$0xff]  ;;  %v1746_v3 = vld [vmem:[%s2246_s13 + $0x8] sm:$0xff]  ;;  %s2082_s21 = smov 96   ;;  %vm553_vm1 = vcmask 1043456   ;;  %vm404_vm2 = vcmask 64512   ;;  %s2083_s29 = smov 120  }
  0x36   : > { %v1837_v4 = vld [vmem:[%s2569_s2] ss:$0 sm:$0xff]  ;;  %s2084_s23 = smov 88   ;;  %s2085_s15 = smov 80   ;;  %vm881_vm3 = vcmask 130112   ;;  %vm1130_vm4 = vcmask 195712  }
  0x37   : > { %s2086_s16 = smov 56   ;;  %s2087_s17 = smov 112   ;;  %vm1379_vm5 = vcmask 261312  }
  0x38   : > { %s2088_s11 = smov 48   ;;  %s2089_s20 = smov 72  }
  0x39   : > { %383 = vmatpush.bf16.msra.mxu0 %v1747_v1  ;;  %s2090_s19 = smov 104   ;;  %s2091_s1 = smov 40  }
  0x3a   : > { %s2092_s30 = smov 8   ;;  %s2093_s12 = smov 16  }
  0x3c   : > { %1695 = vmatmul.msk.bf16.vlgmr.msra.gmra.mxu0 %vm369_vm0, %v1745_v2 }
  0x4c   : > { %1696 = vmatmul.msk.bf16.gmra.mxu0 %vm369_vm0, %v1746_v3 }
  0xb9   : > { %v385_v5 = vpop.f32.mrf.mxu0 }
  0xba   : > { %v386_v6 = vadd.f32 %v1837_v4, %v385_v5 }
  0xbc   : > { %v395_v7 = vpack.c.bf16 %v386_v6, %v386_v6 }
  0xbe   : > { %v400_v8 = vunpack.c.l.b16 %v395_v7 }
  0xc0   : > { %v2263_v9 = vpack.c.b16 %v400_v8, %v400_v8 }
  0xc1   : > { %v387_v10 = vpop.f32.mrf.mxu0 }
  0xc2   : > { %v388_v11 = vadd.f32 %v1837_v4, %v387_v10  ;;  %548 = vrot.lane.b32.xlu2 %v2263_v9, %s2081_s18 }
  0xc4   : > { %v396_v12 = vpack.c.bf16 %v388_v11, %v388_v11 }
  0xc6   : > { %v425_v13 = vunpack.c.l.b16 %v396_v12 }
  0xc8   : > { %v2267_v14 = vpack.c.b16 %v425_v13, %v425_v13 }
  0xc9   : > { %v390_v15 = vpop.f32.mrf.mxu0 }
  0xca   : > { %v391_v16 = vadd.f32 %v1837_v4, %v390_v15  ;;  %427 = vrot.lane.b32.xlu0 %v2267_v14, %s2082_s21  ;;  %570 = vrot.lane.b32.xlu2 %v2267_v14, %s2081_s18 }
  0xcc   : > { %v397_v17 = vpack.c.bf16 %v391_v16, %v391_v16 }
  0xce   : > { %v449_v18 = vunpack.c.l.b16 %v397_v17 }
  0xd0   : > { %v2272_v19 = vpack.c.b16 %v449_v18, %v449_v18 }
  0xd1   : > { %v392_v20 = vpop.f32.mrf.mxu0 }
  0xd2   : > { %451 = vrot.lane.b32.xlu1 %v2272_v19, %s2082_s21  ;;  %402 = vrot.lane.b32.xlu0 %v2263_v9, %s2082_s21  ;;  %v393_v21 = vadd.f32 %v1837_v4, %v392_v20 }
  0xd4   : > { %v398_v22 = vpack.c.bf16 %v393_v21, %v393_v21 }
  0xd6   : > { %v473_v23 = vunpack.c.l.b16 %v398_v22 }
  0xd8   : > { %v2276_v24 = vpack.c.b16 %v473_v23, %v473_v23 }
  0xda   : > { %475 = vrot.lane.b32.xlu1 %v2276_v24, %s2082_s21 }
 0x11c   : > { %v549_v25 = vpop.permute.xlu2 %548 }
 0x11d   : > { %v555_v26 = vsel %vm553_vm1, %v549_v25, 0 }
 0x11e   : > { %564 = vmatpush.bf16.msra.mxu2 %v555_v26 }
 0x124   : > { %v571_v29 = vpop.permute.xlu2 %570 }
 0x125   : > { %v576_v34 = vsel %vm553_vm1, %v571_v29, 0 }
 0x13c   : > { %v428_v27 = vpop.permute.xlu0 %427 }
 0x13d   : > { %v433_v28 = vsel %vm404_vm2, %v428_v27, 0 }
 0x13e   : > { %442 = vmatpush.bf16.xpose.msra.mxu3 %v433_v28 }
 0x144   : > { %v452_v30 = vpop.permute.xlu1 %451  ;;  %v403_v31 = vpop.permute.xlu0 %402 }
 0x145   : > { %1698 = vmatmul.msk.bf16.vlgmr.msra.gmra.mxu3 %vm404_vm2, %v396_v12  ;;  %v409_v32 = vsel %vm404_vm2, %v403_v31, 0  ;;  %v457_v33 = vsel %vm404_vm2, %v452_v30, 0 }
 0x146   : > { %418 = vmatpush.bf16.xpose.msra.mxu1 %v409_v32  ;;  %466 = vmatpush.bf16.xpose.msrb.mxu3 %v457_v33 }
 0x14c   : > { %v476_v35 = vpop.permute.xlu1 %475 }
 0x14d   : > { %1697 = vmatmul.msk.bf16.vlgmr.msra.gmra.mxu1 %vm404_vm2, %v395_v7  ;;  %v481_v36 = vsel %vm404_vm2, %v476_v35, 0 }
 0x14e   : > { %585 = vmatpush.bf16.msra.mxu3 %v576_v34  ;;  %490 = vmatpush.bf16.xpose.msrb.mxu1 %v481_v36 }
 0x155   : > { %1699 = vmatmul.msk.bf16.vlgmr.msrb.gmra.mxu3 %vm404_vm2, %v397_v17 }
 0x15d   : > { %1700 = vmatmul.msk.bf16.vlgmr.msrb.gmra.mxu1 %vm404_vm2, %v398_v22 }
 0x1c8   : > { %v444_v37 = vpop.f32.mrf.mxu3 }
 0x1c9   : > { %v497_v42 = vmul.f32 0.35355338, %v444_v37 }
 0x1ca   : > { %v420_v38 = vpop.f32.mrf.mxu1 }
 0x1cb   : > { %v496_v39 = vmul.f32 0.35355338, %v420_v38  ;;  %v503_v44 = vsel %vm404_vm2, %v497_v42, -inf }
 0x1cd   : > { %v500_v40 = vsel %vm404_vm2, %v496_v39, -inf }
 0x1ce   : > { %501 = vmax.xlane.f32.xlu2 %v500_v40 }
 0x1d0   : > { %v446_v41 = vpop.f32.mrf.mxu3 }
 0x1d2   : > { %v422_v43 = vpop.f32.mrf.mxu1 }
 0x1d6   : > { %504 = vmax.xlane.f32.xlu2 %v503_v44 }
 0x1d8   : > { %v468_v45 = vpop.f32.mrf.mxu3 }
 0x1d9   : > { %v498_v46 = vmul.f32 0.35355338, %v468_v45 }
 0x1da   : > { %v492_v47 = vpop.f32.mrf.mxu1 }
 0x1db   : > { %v499_v48 = vmul.f32 0.35355338, %v492_v47  ;;  %v506_v49 = vsel %vm404_vm2, %v498_v46, -inf }
 0x1dc   : > { %507 = vmax.xlane.f32.xlu0 %v506_v49 }
 0x1dd   : > { %v509_v50 = vsel %vm404_vm2, %v499_v48, -inf }
 0x1de   : > { %510 = vmax.xlane.f32.xlu1 %v509_v50 }
 0x1e0   : > { %v470_v51 = vpop.f32.mrf.mxu3 }
 0x1e2   : > { %v494_v52 = vpop.f32.mrf.mxu1 }
 0x1ee   : > { %637 = vrot.lane.b32.xlu2 %v2263_v9, %s2083_s29 }
 0x1f0   : > { %639 = vrot.lane.b32.xlu0 %v2263_v9, %s2084_s23 }
 0x1f7   : > { %662 = vrot.lane.b32.xlu1 %v2267_v14, %s2084_s23 }
 0x1ff   : > { %591 = vrot.lane.b32.xlu1 %v2272_v19, %s2081_s18 }
 0x207   : > { %612 = vrot.lane.b32.xlu1 %v2276_v24, %s2081_s18  ;;  %s2094_s18 = smov 24  }
 0x20f   : > { %685 = vrot.lane.b32.xlu1 %v2272_v19, %s2084_s23 }
 0x217   : > { %708 = vrot.lane.b32.xlu1 %v2276_v24, %s2084_s23 }
 0x21f   : > { %683 = vrot.lane.b32.xlu1 %v2272_v19, %s2083_s29 }
 0x241   : > { %v502_v53 = vpop.xlane.xlu2 %501 }
 0x242   : > { %v512_v54 = vsub.f32 %v496_v39, %v502_v53 }
 0x244   : > { %v516_v55 = vmul.f32 1.442695, %v512_v54 }
 0x246   : > { %1841 = vpow2.f32 %v516_v55 }
 0x249   : > { %v505_v56 = vpop.xlane.xlu2 %504 }
 0x24a   : > { %v513_v57 = vsub.f32 %v497_v42, %v505_v56 }
 0x24c   : > { %v1842_v58 = vpop.eup %1841  ;;  %v518_v59 = vmul.f32 1.442695, %v513_v57 }
 0x24d   : > { %v524_v60 = vsel %vm404_vm2, %v1842_v58, 0.0 }
 0x24e   : > { %1843 = vpow2.f32 %v518_v59  ;;  %525 = vadd.xlane.f32.xlu2 %v524_v60 }
 0x24f   : > { %v508_v61 = vpop.xlane.xlu0 %507 }
 0x250   : > { %v514_v62 = vsub.f32 %v498_v46, %v508_v61 }
 0x251   : > { %v511_v4 = vpop.xlane.xlu1 %510  ;;  %v638_v25 = vpop.permute.xlu2 %637 }
 0x252   : > { %v520_v63 = vmul.f32 1.442695, %v514_v62  ;;  %v515_v17 = vsub.f32 %v499_v48, %v511_v4 }
 0x254   : > { %v1844_v0 = vpop.eup %1843  ;;  %1845 = vpow2.f32 %v520_v63  ;;  %v522_v18 = vmul.f32 1.442695, %v515_v17 }
 0x255   : > { %v527_v1 = vsel %vm404_vm2, %v1844_v0, 0.0 }
 0x256   : > { %528 = vadd.xlane.f32.xlu2 %v527_v1  ;;  %1847 = vpow2.f32 %v522_v18 }
 0x25a   : > { %v1846_v2 = vpop.eup %1845 }
 0x25b   : > { %v530_v3 = vsel %vm404_vm2, %v1846_v2, 0.0 }
 0x25c   : > { %531 = vadd.xlane.f32.xlu0 %v530_v3  ;;  %v1848_v22 = vpop.eup %1847 }
 0x25d   : > { %v533_v23 = vsel %vm404_vm2, %v1848_v22, 0.0 }
 0x262   : > { %v640_v5 = vpop.permute.xlu0 %639 }
 0x263   : > { %v645_v6 = vsel %vm404_vm2, %v640_v5, 0 }
 0x264   : > { %654 = vmatpush.bf16.xpose.msrb.mxu2 %v645_v6 }
 0x269   : > { %v663_v7 = vpop.permute.xlu1 %662 }
 0x26a   : > { %v668_v8 = vsel %vm404_vm2, %v663_v7, 0 }
 0x26b   : > { %677 = vmatpush.bf16.xpose.msrb.mxu3 %v668_v8 }
 0x26e   : > { %660 = vrot.lane.b32.xlu2 %v2267_v14, %s2083_s29 }
 0x270   : > { %706 = vrot.lane.b32.xlu0 %v2276_v24, %s2083_s29 }
 0x271   : > { %v592_v10 = vpop.permute.xlu1 %591 }
 0x272   : > { %v597_v11 = vsel %vm553_vm1, %v592_v10, 0 }
 0x273   : > { %606 = vmatpush.bf16.msrb.mxu0 %v597_v11 }
 0x278   : > { %911 = vrot.lane.b32.xlu0 %v2267_v14, %s2085_s15 }
 0x279   : > { %v613_v12 = vpop.permute.xlu1 %612 }
 0x27a   : > { %v618_v13 = vsel %vm553_vm1, %v613_v12, 0 }
 0x27b   : > { %627 = vmatpush.bf16.msra.mxu1 %v618_v13 }
 0x281   : > { %v686_v15 = vpop.permute.xlu1 %685 }
 0x282   : > { %v691_v16 = vsel %vm404_vm2, %v686_v15, 0 }
 0x283   : > { %700 = vmatpush.bf16.xpose.msra.mxu0 %v691_v16 }
 0x289   : > { %v709_v20 = vpop.permute.xlu1 %708 }
 0x28a   : > { %v714_v21 = vsel %vm404_vm2, %v709_v20, 0 }
 0x28b   : > { %723 = vmatpush.bf16.xpose.msrb.mxu1 %v714_v21 }
 0x291   : > { %v684_v39 = vpop.permute.xlu1 %683 }
 0x297   : > { %534 = vadd.xlane.f32.xlu2 %v533_v23 }
 0x2c1   : > { %v526_v26 = vpop.xlane.xlu2 %525 }
 0x2c2   : > { %1849 = vrcp.f32 %v526_v26 }
 0x2c8   : > { %v1850_v27 = vpop.eup %1849 }
 0x2c9   : > { %v529_v28 = vpop.xlane.xlu2 %528  ;;  %v540_v29 = vmul.f32 %v1850_v27, %v1842_v58 }
 0x2ca   : > { %1851 = vrcp.f32 %v529_v28 }
 0x2cb   : > { %v544_v30 = vpack.c.bf16 %v540_v29, %v540_v29 }
 0x2cd   : > { %1701 = vmatmul.msk.bf16.vlgmr.msra.gmra.mxu2 %vm404_vm2, %v544_v30 }
 0x2cf   : > { %v532_v31 = vpop.xlane.xlu0 %531 }
 0x2d0   : > { %v1852_v32 = vpop.eup %1851  ;;  %1853 = vrcp.f32 %v532_v31 }
 0x2d1   : > { %v541_v33 = vmul.f32 %v1852_v32, %v1844_v0  ;;  %v661_v38 = vpop.permute.xlu2 %660 }
 0x2d3   : > { %v545_v34 = vpack.c.bf16 %v541_v33, %v541_v33 }
 0x2d5   : > { %1702 = vmatmul.msk.bf16.vlgmr.msra.gmra.mxu3 %vm404_vm2, %v545_v34 }
 0x2d6   : > { %v1854_v35 = vpop.eup %1853 }
 0x2d7   : > { %v542_v36 = vmul.f32 %v1854_v35, %v1846_v2 }
 0x2d9   : > { %v546_v37 = vpack.c.bf16 %v542_v36, %v542_v36 }
 0x2db   : > { %1703 = vmatmul.msk.bf16.vlgmr.msrb.gmra.mxu0 %vm404_vm2, %v546_v37 }
 0x2dd   : > { %1705 = vmatmul.msk.bf16.vlgmr.msrb.gmra.mxu2 %vm404_vm2, %v638_v25 }
 0x2e2   : > { %v707_v44 = vpop.permute.xlu0 %706 }
 0x2e5   : > { %1706 = vmatmul.msk.bf16.vlgmr.msrb.gmra.mxu3 %vm404_vm2, %v661_v38 }
 0x2eb   : > { %1707 = vmatmul.msk.bf16.vlgmr.msra.gmra.mxu0 %vm404_vm2, %v684_v39 }
 0x30a   : > { %v535_v40 = vpop.xlane.xlu2 %534 }
 0x30b   : > { %1855 = vrcp.f32 %v535_v40 }
 0x311   : > { %v1856_v41 = vpop.eup %1855 }
 0x312   : > { %v543_v42 = vmul.f32 %v1856_v41, %v1848_v22  ;;  %v912_v22 = vpop.permute.xlu0 %911 }
 0x313   : > { %v917_v26 = vsel %vm404_vm2, %v912_v22, 0 }
 0x314   : > { %v547_v43 = vpack.c.bf16 %v543_v42, %v543_v42 }
 0x316   : > { %1704 = vmatmul.msk.bf16.vlgmr.msra.gmra.mxu1 %vm404_vm2, %v547_v43 }
 0x326   : > { %1708 = vmatmul.msk.bf16.vlgmr.msrb.gmra.mxu1 %vm404_vm2, %v707_v44 }
 0x350   : > { %v566_v45 = vpop.f32.mrf.mxu2 }
 0x351   : > { %633 = vst.msk [vmem:[#allocation2] sm:$0xff] %vm404_vm2, %v566_v45 }
 0x358   : > { %v568_v46 = vpop.f32.mrf.mxu2  ;;  %v587_v47 = vpop.f32.mrf.mxu3 }
 0x359   : > { %634 = vst.msk [vmem:[#allocation2 + $0x8] sm:$0xff] %vm404_vm2, %v587_v47  ;;  %v608_v48 = vpop.f32.mrf.mxu0 }
 0x35a   : > { %635 = vst.msk [vmem:[#allocation2 + $0x10] sm:$0xff] %vm404_vm2, %v608_v48 }
 0x360   : > { %v589_v49 = vpop.f32.mrf.mxu3  ;;  %v656_v50 = vpop.f32.mrf.mxu2 }
 0x361   : > { %v610_v51 = vpop.f32.mrf.mxu0  ;;  %v729_v52 = vmul.f32 0.35355338, %v656_v50 }
 0x363   : > { %v733_v53 = vsel %vm404_vm2, %v729_v52, -inf }
 0x364   : > { %734 = vmax.xlane.f32.xlu2 %v733_v53 }
 0x368   : > { %v658_v54 = vpop.f32.mrf.mxu2  ;;  %v679_v55 = vpop.f32.mrf.mxu3 }
 0x369   : > { %v730_v56 = vmul.f32 0.35355338, %v679_v55  ;;  %v702_v57 = vpop.f32.mrf.mxu0 }
 0x36a   : > { %v731_v3 = vmul.f32 0.35355338, %v702_v57 }
 0x36b   : > { %v736_v58 = vsel %vm404_vm2, %v730_v56, -inf }
 0x36c   : > { %737 = vmax.xlane.f32.xlu1 %v736_v58  ;;  %v739_v4 = vsel %vm404_vm2, %v731_v3, -inf }
 0x370   : > { %v681_v59 = vpop.f32.mrf.mxu3 }
 0x371   : > { %v704_v60 = vpop.f32.mrf.mxu0 }
 0x37c   : > { %781 = vrot.lane.b32.xlu2 %v2263_v9, %s2086_s16 }
 0x384   : > { %888 = vrot.lane.b32.xlu2 %v2263_v9, %s2085_s15 }
 0x385   : > { %802 = vrot.lane.b32.xlu1 %v2267_v14, %s2086_s16 }
 0x38d   : > { %909 = vrot.lane.b32.xlu1 %v2267_v14, %s2087_s17 }
 0x393   : > { %v629_v61 = vpop.f32.mrf.mxu1 }
 0x394   : > { %636 = vst.msk [vmem:[#allocation2 + $0x18] sm:$0xff] %vm404_vm2, %v629_v61 }
 0x39b   : > { %v631_v62 = vpop.f32.mrf.mxu1 }
 0x3a3   : > { %v725_v63 = vpop.f32.mrf.mxu1 }
 0x3a4   : > { %v732_v0 = vmul.f32 0.35355338, %v725_v63 }
 0x3a6   : > { %v742_v2 = vsel %vm404_vm2, %v732_v0, -inf }
 0x3ab   : > { %v727_v1 = vpop.f32.mrf.mxu1 }
 0x3ad   : > { %743 = vmax.xlane.f32.xlu2 %v742_v2 }
 0x3b5   : > { %740 = vmax.xlane.f32.xlu2 %v739_v4 }
 0x3d7   : > { %v735_v5 = vpop.xlane.xlu2 %734 }
 0x3d8   : > { %v745_v6 = vsub.f32 %v729_v52, %v735_v5 }
 0x3da   : > { %v749_v7 = vmul.f32 1.442695, %v745_v6 }
 0x3dc   : > { %1857 = vpow2.f32 %v749_v7 }
 0x3df   : > { %v738_v8 = vpop.xlane.xlu1 %737  ;;  %v782_v10 = vpop.permute.xlu2 %781 }
 0x3e0   : > { %v746_v11 = vsub.f32 %v730_v56, %v738_v8  ;;  %v787_v12 = vsel %vm553_vm1, %v782_v10, 0 }
 0x3e1   : > { %796 = vmatpush.bf16.msra.mxu2 %v787_v12 }
 0x3e2   : > { %v1858_v13 = vpop.eup %1857  ;;  %v751_v15 = vmul.f32 1.442695, %v746_v11 }
 0x3e3   : > { %v757_v16 = vsel %vm404_vm2, %v1858_v13, 0.0 }
 0x3e4   : > { %1859 = vpow2.f32 %v751_v15  ;;  %758 = vadd.xlane.f32.xlu0 %v757_v16 }
 0x3e7   : > { %v889_v17 = vpop.permute.xlu2 %888 }
 0x3e8   : > { %v894_v18 = vsel %vm404_vm2, %v889_v17, 0 }
 0x3e9   : > { %903 = vmatpush.bf16.xpose.msrb.mxu2 %v894_v18 }
 0x3ea   : > { %v1860_v20 = vpop.eup %1859 }
 0x3eb   : > { %v760_v21 = vsel %vm404_vm2, %v1860_v20, 0.0 }
 0x3ec   : > { %761 = vadd.xlane.f32.xlu2 %v760_v21 }
 0x3f7   : > { %v803_v23 = vpop.permute.xlu1 %802 }
 0x3f8   : > { %v808_v25 = vsel %vm553_vm1, %v803_v23, 0  ;;  %823 = vrot.lane.b32.xlu0 %v2272_v19, %s2086_s16 }
 0x3f9   : > { %817 = vmatpush.bf16.msra.mxu3 %v808_v25 }
 0x3fd   : > { %926 = vmatpush.bf16.xpose.msrb.mxu3 %v917_v26 }
 0x3ff   : > { %v910_v50 = vpop.permute.xlu1 %909 }
 0x400   : > { %844 = vrot.lane.b32.xlu0 %v2276_v24, %s2086_s16  ;;  %s2025_s16 = scalar_lea.hbm %s2574_s7, 64 }
 0x404   : > { %886 = vrot.lane.b32.xlu2 %v2263_v9, %s2087_s17 }
 0x408   : > { %934 = vrot.lane.b32.xlu0 %v2272_v19, %s2085_s15 }
 0x410   : > { %957 = vrot.lane.b32.xlu0 %v2276_v24, %s2085_s15  ;;  %s1678_s15 = sshll.u32 %s2242_s14, 5 }
 0x418   : > { %932 = vrot.lane.b32.xlu0 %v2272_v19, %s2087_s17 }
 0x420   : > { %v744_v27 = vpop.xlane.xlu2 %743 }
 0x421   : > { %v748_v28 = vsub.f32 %v732_v0, %v744_v27 }
 0x423   : > { %v755_v29 = vmul.f32 1.442695, %v748_v28 }
 0x425   : > { %1861 = vpow2.f32 %v755_v29 }
 0x428   : > { %v741_v30 = vpop.xlane.xlu2 %740 }
 0x429   : > { %v747_v31 = vsub.f32 %v731_v3, %v741_v30 }
 0x42b   : > { %v1862_v32 = vpop.eup %1861  ;;  %v753_v33 = vmul.f32 1.442695, %v747_v31 }
 0x42c   : > { %v766_v34 = vsel %vm404_vm2, %v1862_v32, 0.0 }
 0x42d   : > { %1863 = vpow2.f32 %v753_v33  ;;  %767 = vadd.xlane.f32.xlu1 %v766_v34 }
 0x433   : > { %v1864_v35 = vpop.eup %1863 }
 0x434   : > { %v763_v36 = vsel %vm404_vm2, %v1864_v35, 0.0 }
 0x435   : > { %764 = vadd.xlane.f32.xlu2 %v763_v36 }
 0x446   : > { %1030 = vrot.lane.b32.xlu1 %v2263_v9, %s2088_s11 }
 0x44d   : > { %955 = vrot.lane.b32.xlu2 %v2276_v24, %s2087_s17 }
 0x455   : > { %1160 = vrot.lane.b32.xlu2 %v2267_v14, %s2089_s20 }
 0x457   : > { %v759_v37 = vpop.xlane.xlu0 %758 }
 0x458   : > { %1865 = vrcp.f32 %v759_v37 }
 0x45e   : > { %v1866_v38 = vpop.eup %1865 }
 0x45f   : > { %v773_v39 = vmul.f32 %v1866_v38, %v1858_v13  ;;  %v762_v40 = vpop.xlane.xlu2 %761 }
 0x460   : > { %1867 = vrcp.f32 %v762_v40 }
 0x461   : > { %v777_v41 = vpack.c.bf16 %v773_v39, %v773_v39 }
 0x463   : > { %1709 = vmatmul.msk.bf16.vlgmr.msra.gmra.mxu2 %vm404_vm2, %v777_v41 }
 0x466   : > { %v1868_v42 = vpop.eup %1867 }
 0x467   : > { %v774_v43 = vmul.f32 %v1868_v42, %v1860_v20  ;;  %v887_v47 = vpop.permute.xlu2 %886 }
 0x469   : > { %v778_v44 = vpack.c.bf16 %v774_v43, %v774_v43 }
 0x46a   : > { %v824_v45 = vpop.permute.xlu0 %823 }
 0x46b   : > { %v829_v46 = vsel %vm553_vm1, %v824_v45, 0  ;;  %1710 = vmatmul.msk.bf16.vlgmr.msra.gmra.mxu3 %vm404_vm2, %v778_v44 }
 0x46c   : > { %838 = vmatpush.bf16.msrb.mxu0 %v829_v46 }
 0x472   : > { %v845_v48 = vpop.permute.xlu0 %844 }
 0x473   : > { %v850_v49 = vsel %vm553_vm1, %v845_v48, 0  ;;  %1713 = vmatmul.msk.bf16.vlgmr.msrb.gmra.mxu2 %vm404_vm2, %v887_v47 }
 0x474   : > { %859 = vmatpush.bf16.msra.mxu1 %v850_v49 }
 0x47a   : > { %v935_v51 = vpop.permute.xlu0 %934 }
 0x47b   : > { %v940_v52 = vsel %vm404_vm2, %v935_v51, 0  ;;  %1714 = vmatmul.msk.bf16.vlgmr.msrb.gmra.mxu3 %vm404_vm2, %v910_v50 }
 0x47c   : > { %949 = vmatpush.bf16.xpose.msra.mxu0 %v940_v52 }
 0x482   : > { %v958_v53 = vpop.permute.xlu0 %957 }
 0x483   : > { %v963_v54 = vsel %vm404_vm2, %v958_v53, 0 }
 0x484   : > { %972 = vmatpush.bf16.xpose.msrb.mxu1 %v963_v54 }
 0x48a   : > { %v933_v2 = vpop.permute.xlu0 %932 }
 0x4a0   : > { %v768_v55 = vpop.xlane.xlu1 %767 }
 0x4a1   : > { %1869 = vrcp.f32 %v768_v55 }
 0x4a7   : > { %v1870_v56 = vpop.eup %1869 }
 0x4a8   : > { %v776_v57 = vmul.f32 %v1870_v56, %v1862_v32  ;;  %v765_v58 = vpop.xlane.xlu2 %764 }
 0x4a9   : > { %1871 = vrcp.f32 %v765_v58 }
 0x4aa   : > { %v780_v59 = vpack.c.bf16 %v776_v57, %v776_v57 }
 0x4ac   : > { %1712 = vmatmul.msk.bf16.vlgmr.msra.gmra.mxu1 %vm404_vm2, %v780_v59 }
 0x4af   : > { %v1872_v60 = vpop.eup %1871 }
 0x4b0   : > { %v775_v61 = vmul.f32 %v1872_v60, %v1864_v35  ;;  %v956_v1 = vpop.permute.xlu2 %955 }
 0x4b2   : > { %v779_v62 = vpack.c.bf16 %v775_v61, %v775_v61 }
 0x4b4   : > { %1711 = vmatmul.msk.bf16.vlgmr.msrb.gmra.mxu0 %vm404_vm2, %v779_v62 }
 0x4b8   : > { %v1031_v63 = vpop.permute.xlu1 %1030  ;;  %v1161_v40 = vpop.permute.xlu2 %1160 }
 0x4b9   : > { %v1036_v0 = vsel %vm553_vm1, %v1031_v63, 0  ;;  %v1166_v44 = vsel %vm404_vm2, %v1161_v40, 0 }
 0x4ba   : > { %1045 = vmatpush.bf16.msra.mxu2 %v1036_v0 }
 0x4bc   : > { %1716 = vmatmul.msk.bf16.vlgmr.msrb.gmra.mxu1 %vm404_vm2, %v956_v1 }
 0x4c4   : > { %1715 = vmatmul.msk.bf16.vlgmr.msra.gmra.mxu0 %vm404_vm2, %v933_v2 }
 0x4e6   : > { %v2384_v3 = vpop.f32.mrf.mxu2 }
 0x4ee   : > { %v800_v4 = vpop.f32.mrf.mxu2  ;;  %v2386_v5 = vpop.f32.mrf.mxu3 }
 0x4f6   : > { %v821_v6 = vpop.f32.mrf.mxu3  ;;  %v905_v7 = vpop.f32.mrf.mxu2 }
 0x4f7   : > { %v978_v8 = vmul.f32 0.35355338, %v905_v7 }
 0x4f9   : > { %v982_v10 = vsel %vm404_vm2, %v978_v8, -inf }
 0x4fa   : > { %983 = vmax.xlane.f32.xlu1 %v982_v10 }
 0x4fe   : > { %v907_v11 = vpop.f32.mrf.mxu2  ;;  %v928_v12 = vpop.f32.mrf.mxu3 }
 0x4ff   : > { %v979_v13 = vmul.f32 0.35355338, %v928_v12 }
 0x501   : > { %v985_v15 = vsel %vm404_vm2, %v979_v13, -inf }
 0x502   : > { %986 = vmax.xlane.f32.xlu0 %v985_v15 }
 0x506   : > { %v930_v16 = vpop.f32.mrf.mxu3 }
 0x516   : > { %1051 = vrot.lane.b32.xlu0 %v2267_v14, %s2088_s11 }
 0x529   : > { %v2392_v17 = vpop.f32.mrf.mxu1 }
 0x531   : > { %v2394_v18 = vpop.f32.mrf.mxu0  ;;  %v863_v20 = vpop.f32.mrf.mxu1 }
 0x539   : > { %v842_v21 = vpop.f32.mrf.mxu0  ;;  %v974_v22 = vpop.f32.mrf.mxu1 }
 0x53a   : > { %v981_v23 = vmul.f32 0.35355338, %v974_v22 }
 0x53c   : > { %v991_v25 = vsel %vm404_vm2, %v981_v23, -inf }
 0x53d   : > { %992 = vmax.xlane.f32.xlu1 %v991_v25 }
 0x541   : > { %v951_v26 = vpop.f32.mrf.mxu0  ;;  %v976_v27 = vpop.f32.mrf.mxu1 }
 0x542   : > { %v980_v28 = vmul.f32 0.35355338, %v951_v26 }
 0x544   : > { %v988_v29 = vsel %vm404_vm2, %v980_v28, -inf }
 0x545   : > { %989 = vmax.xlane.f32.xlu1 %v988_v29 }
 0x549   : > { %v953_v30 = vpop.f32.mrf.mxu0 }
 0x55e   : > { %1137 = vrot.lane.b32.xlu1 %v2263_v9, %s2089_s20 }
 0x56d   : > { %v984_v31 = vpop.xlane.xlu1 %983 }
 0x56e   : > { %v994_v32 = vsub.f32 %v978_v8, %v984_v31 }
 0x570   : > { %v998_v33 = vmul.f32 1.442695, %v994_v32 }
 0x572   : > { %1873 = vpow2.f32 %v998_v33 }
 0x575   : > { %v987_v34 = vpop.xlane.xlu0 %986 }
 0x576   : > { %v995_v35 = vsub.f32 %v979_v13, %v987_v34 }
 0x578   : > { %v1874_v36 = vpop.eup %1873  ;;  %v1000_v38 = vmul.f32 1.442695, %v995_v35 }
 0x579   : > { %v1006_v37 = vsel %vm404_vm2, %v1874_v36, 0.0 }
 0x57a   : > { %1007 = vadd.xlane.f32.xlu2 %v1006_v37  ;;  %1875 = vpow2.f32 %v1000_v38 }
 0x580   : > { %v1876_v39 = vpop.eup %1875 }
 0x581   : > { %v1009_v41 = vsel %vm404_vm2, %v1876_v39, 0.0 }
 0x588   : > { %1010 = vadd.xlane.f32.xlu1 %v1009_v41  ;;  %v1052_v42 = vpop.permute.xlu0 %1051 }
 0x589   : > { %v1057_v43 = vsel %vm553_vm1, %v1052_v42, 0 }
 0x58a   : > { %1066 = vmatpush.bf16.msra.mxu3 %v1057_v43 }
 0x58e   : > { %1175 = vmatpush.bf16.xpose.msrb.mxu3 %v1166_v44 }
 0x592   : > { %1135 = vrot.lane.b32.xlu2 %v2263_v9, %s2090_s19 }
 0x59a   : > { %1158 = vrot.lane.b32.xlu2 %v2267_v14, %s2090_s19 }
 0x5a2   : > { %1072 = vrot.lane.b32.xlu2 %v2272_v19, %s2088_s11 }
 0x5aa   : > { %1206 = vrot.lane.b32.xlu2 %v2276_v24, %s2089_s20 }
 0x5b0   : > { %v993_v45 = vpop.xlane.xlu1 %992 }
 0x5b1   : > { %v997_v46 = vsub.f32 %v981_v23, %v993_v45 }
 0x5b2   : > { %1181 = vrot.lane.b32.xlu2 %v2272_v19, %s2090_s19 }
 0x5b3   : > { %v1004_v47 = vmul.f32 1.442695, %v997_v46 }
 0x5b5   : > { %1877 = vpow2.f32 %v1004_v47 }
 0x5b8   : > { %v990_v48 = vpop.xlane.xlu1 %989 }
 0x5b9   : > { %v996_v49 = vsub.f32 %v980_v28, %v990_v48 }
 0x5ba   : > { %1204 = vrot.lane.b32.xlu2 %v2276_v24, %s2090_s19 }
 0x5bb   : > { %v1878_v50 = vpop.eup %1877  ;;  %v1002_v51 = vmul.f32 1.442695, %v996_v49 }
 0x5bc   : > { %v1015_v52 = vsel %vm404_vm2, %v1878_v50, 0.0 }
 0x5bd   : > { %1879 = vpow2.f32 %v1002_v51  ;;  %1016 = vadd.xlane.f32.xlu1 %v1015_v52 }
 0x5c3   : > { %v1880_v53 = vpop.eup %1879 }
 0x5c4   : > { %v1012_v54 = vsel %vm404_vm2, %v1880_v53, 0.0 }
 0x5c5   : > { %1013 = vadd.xlane.f32.xlu0 %v1012_v54 }
 0x5d0   : > { %v1138_v55 = vpop.permute.xlu1 %1137 }
 0x5d1   : > { %v1143_v56 = vsel %vm404_vm2, %v1138_v55, 0 }
 0x5d2   : > { %1152 = vmatpush.bf16.xpose.msrb.mxu2 %v1143_v56 }
 0x5d6   : > { %1183 = vrot.lane.b32.xlu1 %v2272_v19, %s2089_s20  ;;  %s1751_s20 = sshll.u32 %s2158_s28, 5  ;;  %s1559_s28 = scalar_lea.sflag [#allocation5], %s2242_s14 }
 0x5d9   : > { %1093 = vrot.lane.b32.xlu0 %v2276_v24, %s2088_s11  ;;  %s2519_s11 = scalar_lea.vmem [#allocation9], %s1678_s15 }
 0x5ed   : > { %v1008_v57 = vpop.xlane.xlu2 %1007 }
 0x5ee   : > { %1881 = vrcp.f32 %v1008_v57 }
 0x5f4   : > { %v1882_v58 = vpop.eup %1881 }
 0x5f5   : > { %v1022_v59 = vmul.f32 %v1882_v58, %v1874_v36  ;;  %v1136_v60 = vpop.permute.xlu2 %1135 }
 0x5f7   : > { %v1026_v61 = vpack.c.bf16 %v1022_v59, %v1022_v59 }
 0x5f9   : > { %1717 = vmatmul.msk.bf16.vlgmr.msra.gmra.mxu2 %vm404_vm2, %v1026_v61 }
 0x5fb   : > { %v1011_v62 = vpop.xlane.xlu1 %1010 }
 0x5fc   : > { %1883 = vrcp.f32 %v1011_v62 }
 0x5fd   : > { %v1159_v63 = vpop.permute.xlu2 %1158 }
 0x602   : > { %v1884_v0 = vpop.eup %1883 }
 0x603   : > { %v1023_v1 = vmul.f32 %v1884_v0, %v1876_v39 }
 0x605   : > { %v1027_v2 = vpack.c.bf16 %v1023_v1, %v1023_v1  ;;  %v1073_v4 = vpop.permute.xlu2 %1072 }
 0x606   : > { %v1078_v6 = vsel %vm553_vm1, %v1073_v4, 0 }
 0x607   : > { %1718 = vmatmul.msk.bf16.vlgmr.msra.gmra.mxu3 %vm404_vm2, %v1027_v2  ;;  %1087 = vmatpush.bf16.msrb.mxu0 %v1078_v6 }
 0x609   : > { %1721 = vmatmul.msk.bf16.vlgmr.msrb.gmra.mxu2 %vm404_vm2, %v1136_v60 }
 0x60d   : > { %v1207_v16 = vpop.permute.xlu2 %1206 }
 0x60e   : > { %v1212_v25 = vsel %vm404_vm2, %v1207_v16, 0 }
 0x615   : > { %v1182_v27 = vpop.permute.xlu2 %1181 }
 0x617   : > { %1722 = vmatmul.msk.bf16.vlgmr.msrb.gmra.mxu3 %vm404_vm2, %v1159_v63 }
 0x61d   : > { %v1205_v28 = vpop.permute.xlu2 %1204 }
 0x630   : > { %v1017_v8 = vpop.xlane.xlu1 %1016 }
 0x638   : > { %v1014_v7 = vpop.xlane.xlu0 %1013 }
 0x639   : > { %1885 = vrcp.f32 %v1014_v7 }
 0x63a   : > { %1887 = vrcp.f32 %v1017_v8 }
 0x63f   : > { %v1886_v10 = vpop.eup %1885 }
 0x640   : > { %v1024_v11 = vmul.f32 %v1886_v10, %v1880_v53  ;;  %v1888_v13 = vpop.eup %1887 }
 0x641   : > { %v1025_v21 = vmul.f32 %v1888_v13, %v1878_v50 }
 0x642   : > { %v1028_v12 = vpack.c.bf16 %v1024_v11, %v1024_v11 }
 0x643   : > { %v1029_v26 = vpack.c.bf16 %v1025_v21, %v1025_v21 }
 0x644   : > { %1719 = vmatmul.msk.bf16.vlgmr.msrb.gmra.mxu0 %vm404_vm2, %v1028_v12 }
 0x648   : > { %v1184_v15 = vpop.permute.xlu1 %1183 }
 0x649   : > { %v1189_v20 = vsel %vm404_vm2, %v1184_v15, 0 }
 0x64a   : > { %1198 = vmatpush.bf16.xpose.msra.mxu0 %v1189_v20 }
 0x64b   : > { %v1094_v22 = vpop.permute.xlu0 %1093 }
 0x64c   : > { %v1099_v23 = vsel %vm553_vm1, %v1094_v22, 0 }
 0x64d   : > { %1108 = vmatpush.bf16.msra.mxu1 %v1099_v23 }
 0x650   : > { %1720 = vmatmul.msk.bf16.vlgmr.msra.gmra.mxu1 %vm404_vm2, %v1029_v26 }
 0x651   : > { %1221 = vmatpush.bf16.xpose.msrb.mxu1 %v1212_v25 }
 0x654   : > { %1723 = vmatmul.msk.bf16.vlgmr.msra.gmra.mxu0 %vm404_vm2, %v1182_v27 }
 0x660   : > { %1724 = vmatmul.msk.bf16.vlgmr.msrb.gmra.mxu1 %vm404_vm2, %v1205_v28 }
 0x67c   : > { %v1047_v29 = vpop.f32.mrf.mxu2 }
 0x684   : > { %v1049_v30 = vpop.f32.mrf.mxu2 }
 0x68a   : > { %v1068_v31 = vpop.f32.mrf.mxu3 }
 0x68c   : > { %v1154_v32 = vpop.f32.mrf.mxu2 }
 0x68d   : > { %v1227_v33 = vmul.f32 0.35355338, %v1154_v32 }
 0x68f   : > { %v1231_v34 = vsel %vm404_vm2, %v1227_v33, -inf }
 0x690   : > { %1232 = vmax.xlane.f32.xlu0 %v1231_v34 }
 0x692   : > { %v1070_v35 = vpop.f32.mrf.mxu3 }
 0x694   : > { %v1156_v36 = vpop.f32.mrf.mxu2 }
 0x69a   : > { %v1177_v37 = vpop.f32.mrf.mxu3 }
 0x69b   : > { %v1228_v38 = vmul.f32 0.35355338, %v1177_v37 }
 0x69d   : > { %v1234_v39 = vsel %vm404_vm2, %v1228_v38, -inf }
 0x69e   : > { %1235 = vmax.xlane.f32.xlu2 %v1234_v39 }
 0x6a2   : > { %v1179_v40 = vpop.f32.mrf.mxu3 }
 0x6c1   : > { %v2433_v41 = vpop.f32.mrf.mxu0 }
 0x6c9   : > { %v1091_v42 = vpop.f32.mrf.mxu0 }
 0x6cd   : > { %v2435_v43 = vpop.f32.mrf.mxu1 }
 0x6d1   : > { %v1200_v44 = vpop.f32.mrf.mxu0 }
 0x6d2   : > { %v1229_v45 = vmul.f32 0.35355338, %v1200_v44 }
 0x6d4   : > { %v1237_v46 = vsel %vm404_vm2, %v1229_v45, -inf }
 0x6d5   : > { %1238 = vmax.xlane.f32.xlu1 %v1237_v46  ;;  %v1112_v47 = vpop.f32.mrf.mxu1 }
 0x6d9   : > { %v1202_v48 = vpop.f32.mrf.mxu0 }
 0x6dd   : > { %v1223_v49 = vpop.f32.mrf.mxu1 }
 0x6de   : > { %v1230_v50 = vmul.f32 0.35355338, %v1223_v49 }
 0x6e0   : > { %v1240_v51 = vsel %vm404_vm2, %v1230_v50, -inf }
 0x6e1   : > { %1241 = vmax.xlane.f32.xlu0 %v1240_v51  ;;  %v1749_v51 = vld [vmem:[#allocation8] sm:$0xff] }
 0x6e5   : > { %v1225_v52 = vpop.f32.mrf.mxu1 }
 0x6f5   : > { %1279 = vrot.lane.b32.xlu0 %v2263_v9, %s2091_s1 }
 0x6fd   : > { %1321 = vrot.lane.b32.xlu0 %v2272_v19, %s2091_s1 }
 0x703   : > { %v1233_v53 = vpop.xlane.xlu0 %1232 }
 0x704   : > { %v1243_v54 = vsub.f32 %v1227_v33, %v1233_v53 }
 0x705   : > { %869 = vrot.lane.b32.xlu0 %v2384_v3, %s2092_s30 }
 0x706   : > { %v1247_v55 = vmul.f32 1.442695, %v1243_v54 }
 0x708   : > { %1889 = vpow2.f32 %v1247_v55 }
 0x70d   : > { %1118 = vrot.lane.b32.xlu0 %v1047_v29, %s2093_s12 }
 0x70e   : > { %v1890_v56 = vpop.eup %1889 }
 0x70f   : > { %v1255_v57 = vsel %vm404_vm2, %v1890_v56, 0.0 }
 0x710   : > { %1256 = vadd.xlane.f32.xlu2 %v1255_v57 }
 0x711   : > { %v1236_v61 = vpop.xlane.xlu2 %1235 }
 0x712   : > { %v1244_v63 = vsub.f32 %v1228_v38, %v1236_v61 }
 0x728   : > { %1300 = vrot.lane.b32.xlu2 %v2267_v14, %s2091_s1  ;;  %v1249_v14 = vmul.f32 1.442695, %v1244_v63 }
 0x730   : > { %871 = vrot.lane.b32.xlu2 %v2386_v5, %s2092_s30 }
 0x738   : > { %1120 = vrot.lane.b32.xlu2 %v1068_v31, %s2093_s12 }
 0x748   : > { %v1239_v9 = vpop.xlane.xlu1 %1238 }
 0x749   : > { %v1245_v58 = vsub.f32 %v1229_v45, %v1239_v9 }
 0x74b   : > { %v1251_v60 = vmul.f32 1.442695, %v1245_v58  ;;  %v335_v58 = vld [vmem:[%s2246_s13] sm:$0xff]  }
 0x754   : > { %v1242_v19 = vpop.xlane.xlu0 %1241 }
 0x755   : > { %v1246_v3 = vsub.f32 %v1230_v50, %v1242_v19 }
 0x757   : > { %v1253_v59 = vmul.f32 1.442695, %v1246_v3 }
 0x759   : > { %1891 = vpow2.f32 %v1253_v59  ;;  %v1838_v59 = vld [vmem:[%s2571_s4] ss:$0 sm:$0xff] }
 0x75a   : > { %1893 = vpow2.f32 %v1251_v60  ;;  %v1435_v60 = vunpack.c.l.bf16 %v335_v58 }
 0x75b   : > { %1895 = vpow2.f32 %v1249_v14  ;;  %v1436_v14 = vunpack.c.h.bf16 %v335_v58 }
 0x75f   : > { %v1892_v62 = vpop.eup %1891 }
 0x760   : > { %v1264_v0 = vsel %vm404_vm2, %v1892_v62, 0.0  ;;  %v1894_v1 = vpop.eup %1893 }
 0x761   : > { %1265 = vadd.xlane.f32.xlu1 %v1264_v0  ;;  %v1261_v4 = vsel %vm404_vm2, %v1894_v1, 0.0  ;;  %v1896_v6 = vpop.eup %1895 }
 0x762   : > { %v1258_v10 = vsel %vm404_vm2, %v1896_v6, 0.0 }
 0x767   : > { %v1280_v5 = vpop.permute.xlu0 %1279 }
 0x768   : > { %v1285_v2 = vsel %vm553_vm1, %v1280_v5, 0 }
 0x769   : > { %1262 = vadd.xlane.f32.xlu1 %v1261_v4  ;;  %1294 = vmatpush.bf16.msra.mxu2 %v1285_v2  ;;  %v337_v4 = vld [vmem:[%s2246_s13 + $0x8] sm:$0xff]  }
 0x76f   : > { %v1322_v7 = vpop.permute.xlu0 %1321 }
 0x770   : > { %v1327_v8 = vsel %vm553_vm1, %v1322_v7, 0  ;;  %v1437_v7 = vunpack.c.l.bf16 %v337_v4 }
 0x771   : > { %1259 = vadd.xlane.f32.xlu1 %v1258_v10  ;;  %1336 = vmatpush.bf16.msrb.mxu0 %v1327_v8 }
 0x777   : > { %v870_v11 = vpop.permute.xlu0 %869 }
 0x778   : > { %882 = vst.msk [vmem:[#allocation2] sm:$0xff] %vm881_vm3, %v870_v11 }
 0x77f   : > { %v1119_v12 = vpop.permute.xlu0 %1118 }
 0x780   : > { %1131 = vst.msk [vmem:[#allocation2] sm:$0xff] %vm1130_vm4, %v1119_v12 }
 0x783   : > { %v1257_v13 = vpop.xlane.xlu2 %1256 }
 0x784   : > { %1897 = vrcp.f32 %v1257_v13  ;;  %v1438_v13 = vunpack.c.h.bf16 %v337_v4 }
 0x78a   : > { %v1898_v15 = vpop.eup %1897  ;;  %1342 = vrot.lane.b32.xlu1 %v2276_v24, %s2091_s1 }
 0x78b   : > { %v1271_v16 = vmul.f32 %v1898_v15, %v1890_v56  ;;  %v1301_v20 = vpop.permute.xlu2 %1300 }
 0x78c   : > { %v1306_v21 = vsel %vm553_vm1, %v1301_v20, 0 }
 0x78d   : > { %v1275_v22 = vpack.c.bf16 %v1271_v16, %v1271_v16  ;;  %1315 = vmatpush.bf16.msra.mxu3 %v1306_v21 }
 0x78f   : > { %1725 = vmatmul.msk.bf16.vlgmr.msra.gmra.mxu2 %vm404_vm2, %v1275_v22  ;;  %v2095_v22 = vmov 32.0  }
 0x792   : > { %873 = vrot.lane.b32.xlu1 %v2394_v18, %s2092_s30 }
 0x793   : > { %v872_v23 = vpop.permute.xlu2 %871 }
 0x794   : > { %883 = vst.msk [vmem:[#allocation2 + $0x8] sm:$0xff] %vm881_vm3, %v872_v23 }
 0x79a   : > { %1124 = vrot.lane.b32.xlu1 %v2435_v43, %s2093_s12 }
 0x79b   : > { %v1121_v25 = vpop.permute.xlu2 %1120 }
 0x79c   : > { %1132 = vst.msk [vmem:[#allocation2 + $0x8] sm:$0xff] %vm1130_vm4, %v1121_v25 }
 0x7d4   : > { %v1266_v24 = vpop.xlane.xlu1 %1265 }
 0x7dc   : > { %v1263_v26 = vpop.xlane.xlu1 %1262 }
 0x7dd   : > { %1899 = vrcp.f32 %v1263_v26 }
 0x7e3   : > { %v1900_v27 = vpop.eup %1899 }
 0x7e4   : > { %v1273_v28 = vmul.f32 %v1900_v27, %v1894_v1  ;;  %v1260_v29 = vpop.xlane.xlu1 %1259 }
 0x7e5   : > { %1901 = vrcp.f32 %v1260_v29 }
 0x7e6   : > { %v1277_v30 = vpack.c.bf16 %v1273_v28, %v1273_v28  ;;  %1903 = vrcp.f32 %v1266_v24 }
 0x7e7   : > { %1905 = vrcp.f32 %v2095_v22 }
 0x7e8   : > { %1727 = vmatmul.msk.bf16.vlgmr.msrb.gmra.mxu0 %vm404_vm2, %v1277_v30 }
 0x7eb   : > { %v1902_v18 = vpop.eup %1901 }
 0x7ec   : > { %v1272_v31 = vmul.f32 %v1902_v18, %v1896_v6  ;;  %v1904_v33 = vpop.eup %1903 }
 0x7ed   : > { %v1274_v34 = vmul.f32 %v1904_v33, %v1892_v62  ;;  %v1906_v23 = vpop.eup %1905 }
 0x7ee   : > { %v1276_v32 = vpack.c.bf16 %v1272_v31, %v1272_v31  ;;  %v1456_v25 = vmul.f32 32.0, %v1906_v23  ;;  %vm1460_vm6 = vweird.f32 %v1906_v23 }
 0x7ef   : > { %v1278_v37 = vpack.c.bf16 %v1274_v34, %v1274_v34 }
 0x7f0   : > { %1726 = vmatmul.msk.bf16.vlgmr.msra.gmra.mxu3 %vm404_vm2, %v1276_v32  ;;  %v1457_v24 = vsub.f32 1.0, %v1456_v25 }
 0x7f2   : > { %v1458_v26 = vmul.f32 %v1906_v23, %v1457_v24 }
 0x7f4   : > { %v1459_v27 = vadd.f32 %v1906_v23, %v1458_v26 }
 0x7f6   : > { %v1461_v28 = vsel %vm1460_vm6, %v1906_v23, %v1459_v27 }
 0x7fc   : > { %v1343_v35 = vpop.permute.xlu1 %1342 }
 0x7fd   : > { %v1348_v36 = vsel %vm553_vm1, %v1343_v35, 0 }
 0x7fe   : > { %1357 = vmatpush.bf16.msra.mxu1 %v1348_v36 }
 0x801   : > { %1728 = vmatmul.msk.bf16.vlgmr.msra.gmra.mxu1 %vm404_vm2, %v1278_v37 }
 0x804   : > { %v874_v38 = vpop.permute.xlu1 %873 }
 0x805   : > { %884 = vst.msk [vmem:[#allocation2 + $0x10] sm:$0xff] %vm881_vm3, %v874_v38 }
 0x80c   : > { %v1125_v50 = vpop.permute.xlu1 %1124 }
 0x812   : > { %v1296_v39 = vpop.f32.mrf.mxu2 }
 0x813   : > { %1367 = vrot.lane.b32.xlu0 %v1296_v39, %s2094_s18 }
 0x81a   : > { %v1298_v40 = vpop.f32.mrf.mxu2 }
 0x81b   : > { %875 = vrot.lane.b32.xlu0 %v2392_v17, %s2092_s30  ;;  %v1750_v17 = vld [vmem:[#allocation8 + $0x8] sm:$0xff] }
 0x81c   : > { %1422 = vmatpush.bf16.msrb.mxu2 %v1750_v17 }
 0x820   : > { %1423 = vmatpush.bf16.msrb.mxu2 %v1749_v51 }
 0x865   : > { %v1338_v42 = vpop.f32.mrf.mxu0 }
 0x866   : > { %1371 = vrot.lane.b32.xlu0 %v1338_v42, %s2094_s18 }
 0x86d   : > { %v1340_v43 = vpop.f32.mrf.mxu0 }
 0x873   : > { %v1317_v44 = vpop.f32.mrf.mxu3 }
 0x874   : > { %1369 = vrot.lane.b32.xlu2 %v1317_v44, %s2094_s18 }
 0x87b   : > { %v1319_v45 = vpop.f32.mrf.mxu3 }
 0x87c   : > { %1122 = vrot.lane.b32.xlu2 %v2433_v41, %s2093_s12  ;;  %s1570_s12 = scalar_lea.hbm %s2574_s7, %s1751_s20 }
 0x87d   : > { %s1573_s21 = sshll.u32 %s1570_s12, 4  ;;  %s1574_s21 = int_to_ptr.hbm [resolvable:$true] %s1573_s21 }
 0x87e   : > { %v1359_v46 = vpop.f32.mrf.mxu1  ;;  %s2019_s29 = sshra.s32 %s1574_s21, 4  ;;  %s2020_s29 = int_to_ptr.hbm [resolvable:$true] %s2019_s29 }
 0x87f   : > { %s2021_s13 = scalar_lea.hbm %s2020_s29, 32  ;;  %p2026_p11 = scmp.lt.s32.totalorder %s2020_s29, %s2574_s7 }
 0x880   : > { %p2022_p1 = scmp.ne.s32.totalorder %s2020_s29, %s2021_s13  ;;  %p2027_p2 = scmp.lt.s32.totalorder %s2025_s16, %s2021_s13 }
 0x882   : > { %p2023_p4 = pnand %p2022_p1, %p2209_p3  ;;  %p2028_p9 = por %p2027_p2, %p2026_p11 }
 0x884   : > { %1373 = vrot.lane.b32.xlu2 %v1359_v46, %s2094_s18  ;;  %s1571_s18 = sshll.u32 %s2519_s11, 4  ;;  %p2024_p8 = pneg %p2023_p4  ;;  %s1572_s18 = int_to_ptr.vmem [resolvable:$true] %s1571_s18 }
 0x885   : > { %v1368_v47 = vpop.permute.xlu0 %1367 }
 0x886   : > { %1380 = vst.msk [vmem:[#allocation2] sm:$0xff] %vm1379_vm5, %v1368_v47  ;;  %v1361_v48 = vpop.f32.mrf.mxu1  ;;  %p2029_p10 = pnand %p2028_p9, %p2024_p8 }
 0x88d   : > { %v876_v49 = vpop.permute.xlu0 %875  ;;  %v1384_v53 = vld [vmem:[#allocation2] sm:$0xff] }
 0x88e   : > { %885 = vst.msk [vmem:[#allocation2 + $0x18] sm:$0xff] %vm881_vm3, %v876_v49 }
 0x88f   : > { %1134 = vst.msk [vmem:[#allocation2 + $0x18] sm:$0xff] %vm1130_vm4, %v1125_v50 }
 0x8ce   : > { %v1370_v52 = vpop.permute.xlu2 %1369 }
 0x8cf   : > { %1381 = vst.msk [vmem:[#allocation2 + $0x8] sm:$0xff] %vm1379_vm5, %v1370_v52 }
 0x8d6   : > { %v1123_v41 = vpop.permute.xlu2 %1122  ;;  %v1385_v54 = vld [vmem:[#allocation2 + $0x8] sm:$0xff] }
 0x8d7   : > { %1133 = vst.msk [vmem:[#allocation2 + $0x10] sm:$0xff] %vm1130_vm4, %v1123_v41  ;;  %v1388_v55 = vpack.c.bf16 %v1385_v54, %v1384_v53 }
 0x8d8   : > { %v1372_v56 = vpop.permute.xlu0 %1371 }
 0x8d9   : > { %1382 = vst.msk [vmem:[#allocation2 + $0x10] sm:$0xff] %vm1379_vm5, %v1372_v56  ;;  %1737 = vmatmul.msk.bf16.vlgmr.msrb.gmra.mxu2 %vm369_vm0, %v1388_v55 }
 0x8de   : > { %v1374_v57 = vpop.permute.xlu2 %1373 }
 0x8df   : > { %1383 = vst.msk [vmem:[#allocation2 + $0x18] sm:$0xff] %vm1379_vm5, %v1374_v57 }
 0x8e0   : > { %v1386_v9 = vld [vmem:[#allocation2 + $0x10] sm:$0xff] }
 0x8e6   : > { %v1387_v19 = vld [vmem:[#allocation2 + $0x18] sm:$0xff] }
 0x8e7   : > { %v1389_v3 = vpack.c.bf16 %v1387_v19, %v1386_v9 }
 0x8e9   : > { %1738 = vmatmul.msk.bf16.gmra.mxu2 %vm369_vm0, %v1389_v3 }
 0x95c   : > { %v1425_v61 = vpop.f32.mrf.mxu2 }
 0x95d   : > { %v1426_v62 = vadd.f32 %v1838_v59, %v1425_v61  ;;  %v1839_v61 = vld [vmem:[%s2572_s5] ss:$0 sm:$0xff] }
 0x95f   : > { %v1439_v63 = vadd.f32 %v1435_v60, %v1426_v62 }
 0x961   : > { %v1443_v0 = vsel %vm369_vm0, %v1439_v63, 0.0 }
 0x962   : > { %1444 = vadd.xlane.f32.xlu1 %v1443_v0  ;;  %v1840_v0 = vld [vmem:[%s2573_s6] ss:$0 sm:$0xff] }
 0x964   : > { %v1427_v1 = vpop.f32.mrf.mxu2 }
 0x965   : > { %v1428_v5 = vadd.f32 %v1838_v59, %v1427_v1 }
 0x967   : > { %v1440_v2 = vadd.f32 %v1436_v14, %v1428_v5 }
 0x969   : > { %v1446_v6 = vsel %vm369_vm0, %v1440_v2, 0.0 }
 0x96a   : > { %1447 = vadd.xlane.f32.xlu0 %v1446_v6 }
 0x96c   : > { %v1430_v8 = vpop.f32.mrf.mxu2 }
 0x96d   : > { %v1431_v10 = vadd.f32 %v1838_v59, %v1430_v8 }
 0x96f   : > { %v1441_v11 = vadd.f32 %v1437_v7, %v1431_v10 }
 0x971   : > { %v1449_v12 = vsel %vm369_vm0, %v1441_v11, 0.0 }
 0x972   : > { %1450 = vadd.xlane.f32.xlu2 %v1449_v12 }
 0x974   : > { %v1432_v15 = vpop.f32.mrf.mxu2 }
 0x975   : > { %v1433_v16 = vadd.f32 %v1838_v59, %v1432_v15 }
 0x977   : > { %v1442_v20 = vadd.f32 %v1438_v13, %v1433_v16 }
 0x979   : > { %v1452_v21 = vsel %vm369_vm0, %v1442_v20, 0.0 }
 0x97a   : > { %1453 = vadd.xlane.f32.xlu1 %v1452_v21 }
 0x9d5   : > { %v1445_v29 = vpop.xlane.xlu1 %1444 }
 0x9d6   : > { %v1462_v30 = vmul.f32 %v1461_v28, %v1445_v29 }
 0x9d8   : > { %v1466_v18 = vsub.f32 %v1439_v63, %v1462_v30 }
 0x9da   : > { %v1470_v31 = vmul.f32 %v1466_v18, %v1466_v18 }
 0x9dc   : > { %v1474_v32 = vsel %vm369_vm0, %v1470_v31, 0.0 }
 0x9dd   : > { %v1448_v33 = vpop.xlane.xlu0 %1447  ;;  %1475 = vadd.xlane.f32.xlu2 %v1474_v32 }
 0x9de   : > { %v1463_v34 = vmul.f32 %v1461_v28, %v1448_v33 }
 0x9e0   : > { %v2497_v35 = vsub.f32 %v1440_v2, %v1463_v34 }
 0x9e2   : > { %v1471_v36 = vmul.f32 %v2497_v35, %v2497_v35 }
 0x9e4   : > { %v1477_v37 = vsel %vm369_vm0, %v1471_v36, 0.0 }
 0x9e5   : > { %v1451_v38 = vpop.xlane.xlu2 %1450  ;;  %1478 = vadd.xlane.f32.xlu0 %v1477_v37 }
 0x9e6   : > { %v1464_v39 = vmul.f32 %v1461_v28, %v1451_v38 }
 0x9e8   : > { %v2502_v40 = vsub.f32 %v1441_v11, %v1464_v39 }
 0x9ea   : > { %v1472_v42 = vmul.f32 %v2502_v40, %v2502_v40 }
 0x9ec   : > { %v1480_v43 = vsel %vm369_vm0, %v1472_v42, 0.0 }
 0x9ed   : > { %1481 = vadd.xlane.f32.xlu1 %v1480_v43  ;;  %v1454_v44 = vpop.xlane.xlu1 %1453 }
 0x9ee   : > { %v1465_v45 = vmul.f32 %v1461_v28, %v1454_v44 }
 0x9f0   : > { %v2507_v46 = vsub.f32 %v1442_v20, %v1465_v45 }
 0x9f2   : > { %v1473_v47 = vmul.f32 %v2507_v46, %v2507_v46 }
 0x9f4   : > { %v1483_v48 = vsel %vm369_vm0, %v1473_v47, 0.0 }
 0x9f5   : > { %1484 = vadd.xlane.f32.xlu2 %v1483_v48 }
 0xa50   : > { %v1476_v49 = vpop.xlane.xlu2 %1475 }
 0xa51   : > { %v1486_v50 = vmul.f32 %v1476_v49, %v1461_v28 }
 0xa53   : > { %v1490_v17 = vadd.f32 1e-05, %v1486_v50 }
 0xa55   : > { %1907 = vrsqrt.f32 %v1490_v17  ;;  %vm1500_vm8 = vweird.f32 %v1490_v17 }
 0xa58   : > { %v1479_v51 = vpop.xlane.xlu0 %1478 }
 0xa59   : > { %v1487_v52 = vmul.f32 %v1479_v51, %v1461_v28 }
 0xa5b   : > { %v1908_v41 = vpop.eup %1907  ;;  %v1491_v53 = vadd.f32 1e-05, %v1487_v52 }
 0xa5c   : > { %v1495_v54 = vmul.f32 %v1908_v41, %v1490_v17  ;;  %vm1501_vm7 = vweird.f32 %v1908_v41 }
 0xa5d   : > { %1909 = vrsqrt.f32 %v1491_v53  ;;  %vm1502_vm9 = vmor %vm1500_vm8, %vm1501_vm7  ;;  %vm1510_vm11 = vweird.f32 %v1491_v53 }
 0xa5e   : > { %v1496_v55 = vmul.f32 %v1908_v41, %v1495_v54 }
 0xa60   : > { %v1497_v56 = vmul.f32 0.5, %v1496_v55  ;;  %v1482_v57 = vpop.xlane.xlu1 %1481 }
 0xa61   : > { %v1488_v9 = vmul.f32 %v1482_v57, %v1461_v28 }
 0xa62   : > { %v1498_v19 = vsub.f32 1.5, %v1497_v56 }
 0xa63   : > { %v1910_v3 = vpop.eup %1909  ;;  %v1492_v58 = vadd.f32 1e-05, %v1488_v9 }
 0xa64   : > { %v1499_v59 = vmul.f32 %v1908_v41, %v1498_v19  ;;  %v1505_v60 = vmul.f32 %v1910_v3, %v1491_v53  ;;  %vm1511_vm10 = vweird.f32 %v1910_v3 }
 0xa65   : > { %1911 = vrsqrt.f32 %v1492_v58  ;;  %vm1512_vm12 = vmor %vm1510_vm11, %vm1511_vm10  ;;  %vm1520_vm14 = vweird.f32 %v1492_v58 }
 0xa66   : > { %v1503_v62 = vsel %vm1502_vm9, %v1908_v41, %v1499_v59  ;;  %v1506_v63 = vmul.f32 %v1910_v3, %v1505_v60 }
 0xa67   : > { %v1534_v14 = vmul.f32 %v1503_v62, %v1466_v18 }
 0xa68   : > { %v1507_v1 = vmul.f32 0.5, %v1506_v63  ;;  %v1485_v5 = vpop.xlane.xlu2 %1484 }
 0xa69   : > { %v1542_v2 = vmul.f32 %v1839_v61, %v1534_v14  ;;  %v1489_v4 = vmul.f32 %v1485_v5, %v1461_v28 }
 0xa6a   : > { %v1508_v6 = vsub.f32 1.5, %v1507_v1 }
 0xa6b   : > { %v1912_v7 = vpop.eup %1911  ;;  %v1550_v8 = vadd.f32 %v1840_v0, %v1542_v2  ;;  %v1493_v10 = vadd.f32 1e-05, %v1489_v4 }
 0xa6c   : > { %v1509_v11 = vmul.f32 %v1910_v3, %v1508_v6  ;;  %v1515_v12 = vmul.f32 %v1912_v7, %v1492_v58  ;;  %vm1521_vm13 = vweird.f32 %v1912_v7 }
 0xa6d   : > { %1554 = vst.msk [vmem:[%s2519_s11] sm:$0xff] %vm369_vm0, %v1550_v8  ;;  %1913 = vrsqrt.f32 %v1493_v10  ;;  %vm1522_vm15 = vmor %vm1520_vm14, %vm1521_vm13  ;;  %vm1530_vm2 = vweird.f32 %v1493_v10 }
 0xa6e   : > { %v1513_v13 = vsel %vm1512_vm12, %v1910_v3, %v1509_v11  ;;  %v1516_v15 = vmul.f32 %v1912_v7, %v1515_v12 }
 0xa6f   : > { %v1535_v16 = vmul.f32 %v1513_v13, %v2497_v35 }
 0xa70   : > { %v1517_v20 = vmul.f32 0.5, %v1516_v15 }
 0xa71   : > { %v1543_v21 = vmul.f32 %v1839_v61, %v1535_v16 }
 0xa72   : > { %v1518_v22 = vsub.f32 1.5, %v1517_v20 }
 0xa73   : > { %v1914_v23 = vpop.eup %1913  ;;  %v1551_v25 = vadd.f32 %v1840_v0, %v1543_v21 }
 0xa74   : > { %v1519_v24 = vmul.f32 %v1912_v7, %v1518_v22  ;;  %v1525_v26 = vmul.f32 %v1914_v23, %v1493_v10  ;;  %vm1531_vm1 = vweird.f32 %v1914_v23 }
 0xa75   : > { %1555 = vst.msk [vmem:[%s2519_s11 + $0x8] sm:$0xff] %vm369_vm0, %v1551_v25  ;;  %vm1532_vm3 = vmor %vm1530_vm2, %vm1531_vm1 }
 0xa76   : > { %v1523_v27 = vsel %vm1522_vm15, %v1912_v7, %v1519_v24  ;;  %v1526_v28 = vmul.f32 %v1914_v23, %v1525_v26 }
 0xa77   : > { %v1536_v29 = vmul.f32 %v1523_v27, %v2502_v40 }
 0xa78   : > { %v1527_v30 = vmul.f32 0.5, %v1526_v28 }
 0xa79   : > { %v1544_v18 = vmul.f32 %v1839_v61, %v1536_v29 }
 0xa7a   : > { %v1528_v31 = vsub.f32 1.5, %v1527_v30 }
 0xa7b   : > { %v1552_v32 = vadd.f32 %v1840_v0, %v1544_v18 }
 0xa7c   : > { %v1529_v33 = vmul.f32 %v1914_v23, %v1528_v31 }
 0xa7d   : > { %1556 = vst.msk [vmem:[%s2519_s11 + $0x10] sm:$0xff] %vm369_vm0, %v1552_v32 }
 0xa7e   : > { %v1533_v34 = vsel %vm1532_vm3, %v1914_v23, %v1529_v33 }
 0xa7f   : > { %v1537_v35 = vmul.f32 %v1533_v34, %v2507_v46 }
 0xa81   : > { %v1545_v36 = vmul.f32 %v1839_v61, %v1537_v35 }
 0xa83   : > { %v1553_v37 = vadd.f32 %v1840_v0, %v1545_v36 }
 0xa85   : > { %1557 = vst.msk [vmem:[%s2519_s11 + $0x18] sm:$0xff] %vm369_vm0, %v1553_v37 }
 0xa86   : > { %2032 = shalt.err (!%p2029_p10)
}
 0xa87   : > { %s2096_s14 = smov 128  }
 0xa88   : > { %1762 = dma.vmem_to_hbm [thread:$0]  (%p2209_p3), %s1572_s18, 512, %s1574_s21, %s1559_s28, %s2096_s14, %s2096_s14, %s2092_s30  }
 0xa89 PF: > { %s1588_s11 = sand.u32 1, %s2063_s24   ;;  %p2586_p12 = scmp.ge.s32.totalorder %s2075_s27, 2 }
 0xa8a   : > { %s1589_s19 = scalar_lea.sflag [#allocation5], %s1588_s11 }
 0xa8b   : > { %p1776_p13 = pnand %p2586_p12, %p2172_p6 }
 0xa8d   : > { %p1777_p0 = pneg %p1776_p13 }
 0xa8f   : > { %2058 = dma.done.wait (%p1777_p0), %s1589_s19, 512  }
 0xa90   : > { %2060 = vsyncadd (%p1777_p0), %s1589_s19, 4294966784  ;;  %p21_p5 = scmp.ge.s32.totalorder %s2199_s22, 4   ;;  %s2587_s24 = smov %s2067_s25 }
 0xa91   : > { %s2588_s25 = smov %s2071_s26  ;;  %s2589_s26 = smov %s2215_s10 }
 0xa92   : > { %s2590_s27 = smov %s2199_s22  ;;  %23 = sbr.rel (!%p21_p5) target bundleno = 8 (0x8), region = 101 }
 0xa97   :  { %1595 = vsyncpa [#allocation4], 1 }
 0xa98   :  { %1597 = vsyncpa [#allocation4 + $0x1], 1 }
 0xa99   :  { %1598 = vsyncpa [#allocation7], 1 }
 0xa9a   :  { %1599 = vsyncpa [#allocation5], 1 }
 0xa9b   :  { %1601 = vsyncpa [#allocation5 + $0x1], 1 }

</bundles_post_ra>
